<compile_context>
chip_gen: v7x
topology: tpu7x:2x2x1
jax: 0.10.0
libtpu: 0.0.40
codegen_flags: <defaults>
</compile_context>

<pallas_src>
import math

import jax
import jax.numpy as jnp
from jax.experimental import pallas as pl
from jax.experimental.pallas import tpu as pltpu

# ----------------------------- tiny BERT config ------------------------------
VOCAB = 128
HIDDEN = 32
N_HEADS = 2
HEAD_DIM = HIDDEN // N_HEADS
INTERMEDIATE = 64
N_LAYERS = 2
MAX_POS = 16
TYPE_VOCAB = 2
N_TYPES = 8            # len(label_to_vocab_src) == len(label_to_vocab_tgt)
LN_EPS = 1e-12

_VMEM = pl.BlockSpec(memory_space=pltpu.MemorySpace.VMEM)
_SMEM = pl.BlockSpec(memory_space=pltpu.MemorySpace.SMEM)


# ------------------------------ kernel helpers --------------------------------
def _gelu(y):
    # tanh-approx GELU ("gelu_new"); HF exact-erf gelu differs only numerically.
    return 0.5 * y * (1.0 + jnp.tanh(0.7978845608028654 * (y + 0.044715 * y * y * y)))


def _ln(x, g, b):
    mu = jnp.mean(x, axis=-1, keepdims=True)
    xc = x - mu
    var = jnp.mean(xc * xc, axis=-1, keepdims=True)
    return xc * jax.lax.rsqrt(var + LN_EPS) * g + b


# ------------------------------ fused kernel ----------------------------------
def _make_fused_kernel(batch, seq, n_masked, n_types, with_loss):
    scale = 1.0 / math.sqrt(HEAD_DIM)
    inv_n = 1.0 / float(n_masked)

    def kernel(x0_ref, mask_ref, sel_ref,
               emb_ln_g_ref, emb_ln_b_ref,
               qkv_w_ref, qkv_b_ref, o_w_ref, o_b_ref,
               ln1_g_ref, ln1_b_ref,
               f1_w_ref, f1_b_ref, f2_w_ref, f2_b_ref,
               ln2_g_ref, ln2_b_ref,
               mlm_w_ref, mlm_b_ref, mlm_ln_g_ref, mlm_ln_b_ref,
               dec_w_ref, dec_b_ref,
               *rest):
        if with_loss:
            labels_ref, logits_ref, loss_ref, qkv_ref, ctx_ref = rest
        else:
            logits_ref, qkv_ref, ctx_ref = rest

        # ---- embeddings LayerNorm (embedding sum precomputed in JAX glue) -----
        x = _ln(x0_ref[...].astype(jnp.float32),
                emb_ln_g_ref[...], emb_ln_b_ref[...])                 # (T, H)

        # ---- encoder layers.  N_LAYERS=2 -> statically unrolled; for a deep
        #      stack switch to lax.fori_loop with dynamic layer indexing. ------
        for l in range(N_LAYERS):
            # fused QKV projection, staged in VMEM scratch for per-head slicing
            qkv_ref[...] = (jnp.dot(x, qkv_w_ref[l],
                                    preferred_element_type=jnp.float32)
                            + qkv_b_ref[l])
            for b in range(batch):
                mrow = mask_ref[b:b + 1, :]                           # (1, S)
                rs = slice(b * seq, (b + 1) * seq)
                for h in range(N_HEADS):
                    q = qkv_ref[rs, h * HEAD_DIM:(h + 1) * HEAD_DIM]
                    k = qkv_ref[rs, HIDDEN + h * HEAD_DIM:
                                HIDDEN + (h + 1) * HEAD_DIM]
                    v = qkv_ref[rs, 2 * HIDDEN + h * HEAD_DIM:
                                2 * HIDDEN + (h + 1) * HEAD_DIM]
                    # scores = q @ k^T (contract on head dim, no transpose mat.)
                    s = jax.lax.dot_general(q, k, (((1,), (1,)), ((), ())),
                                            preferred_element_type=jnp.float32)
                    s = s * scale + mrow
                    s = s - jnp.max(s, axis=-1, keepdims=True)
                    p = jnp.exp(s)
                    p = p * pl.reciprocal(jnp.sum(p, axis=-1, keepdims=True),
                                          approx=True)
                    ctx_ref[rs, h * HEAD_DIM:(h + 1) * HEAD_DIM] = jnp.dot(
                        p, v, preferred_element_type=jnp.float32)
            attn = (jnp.dot(ctx_ref[...], o_w_ref[l],
                            preferred_element_type=jnp.float32) + o_b_ref[l])
            x = _ln(attn + x, ln1_g_ref[l], ln1_b_ref[l])
            hmid = _gelu(jnp.dot(x, f1_w_ref[l],
                                 preferred_element_type=jnp.float32) + f1_b_ref[l])
            ffn = jnp.dot(hmid, f2_w_ref[l],
                          preferred_element_type=jnp.float32) + f2_b_ref[l]
            x = _ln(ffn + x, ln2_g_ref[l], ln2_b_ref[l])

        # ---- MLM head restricted to masked rows and ind_map decoder columns ---
        xm = jnp.dot(sel_ref[...], x, preferred_element_type=jnp.float32)  # (N,H)
        t = _gelu(jnp.dot(xm, mlm_w_ref[...],
                          preferred_element_type=jnp.float32) + mlm_b_ref[...])
        t = _ln(t, mlm_ln_g_ref[...], mlm_ln_b_ref[...])
        tl = (jnp.dot(t, dec_w_ref[...],
                      preferred_element_type=jnp.float32) + dec_b_ref[...])
        logits_ref[...] = tl                                          # (N, n_types)

        if with_loss:
            lab = labels_ref[...]                                     # (N, 1) int32
            onehot = (jax.lax.broadcasted_iota(jnp.int32, (n_masked, n_types), 1)
                      == lab).astype(jnp.float32)
            m = jnp.max(tl, axis=-1, keepdims=True)
            lse = jnp.log(jnp.sum(jnp.exp(tl - m), axis=-1, keepdims=True)) + m
            picked = jnp.sum(tl * onehot, axis=-1, keepdims=True)
            loss_ref[0, 0] = jnp.sum(lse - picked) * inv_n            # mean NLL

    return kernel


# ------------------------- parameter init (deterministic) ---------------------
def init_params(key):
    keys = iter(jax.random.split(key, 32))

    def w(din, dout):
        return jax.random.normal(next(keys), (din, dout), jnp.float32) * 0.02

    def stack_w(din, dout):
        return jnp.stack([w(din, dout) for _ in range(N_LAYERS)])

    p = {
        "word_emb": jax.random.normal(next(keys), (VOCAB, HIDDEN), jnp.float32) * 0.02,
        "pos_emb": jax.random.normal(next(keys), (MAX_POS, HIDDEN), jnp.float32) * 0.02,
        "type_emb": jax.random.normal(next(keys), (TYPE_VOCAB, HIDDEN), jnp.float32) * 0.02,
        "emb_ln_g": jnp.ones((1, HIDDEN), jnp.float32),
        "emb_ln_b": jnp.zeros((1, HIDDEN), jnp.float32),
        "layers": {
            "qkv_w": stack_w(HIDDEN, 3 * HIDDEN),          # Wq|Wk|Wv concatenated
            "qkv_b": jnp.zeros((N_LAYERS, 1, 3 * HIDDEN), jnp.float32),
            "o_w": stack_w(HIDDEN, HIDDEN),
            "o_b": jnp.zeros((N_LAYERS, 1, HIDDEN), jnp.float32),
            "ln1_g": jnp.ones((N_LAYERS, 1, HIDDEN), jnp.float32),
            "ln1_b": jnp.zeros((N_LAYERS, 1, HIDDEN), jnp.float32),
            "f1_w": stack_w(HIDDEN, INTERMEDIATE),
            "f1_b": jnp.zeros((N_LAYERS, 1, INTERMEDIATE), jnp.float32),
            "f2_w": stack_w(INTERMEDIATE, HIDDEN),
            "f2_b": jnp.zeros((N_LAYERS, 1, HIDDEN), jnp.float32),
            "ln2_g": jnp.ones((N_LAYERS, 1, HIDDEN), jnp.float32),
            "ln2_b": jnp.zeros((N_LAYERS, 1, HIDDEN), jnp.float32),
        },
        "mlm_w": w(HIDDEN, HIDDEN),
        "mlm_b": jnp.zeros((1, HIDDEN), jnp.float32),
        "mlm_ln_g": jnp.ones((1, HIDDEN), jnp.float32),
        "mlm_ln_b": jnp.zeros((1, HIDDEN), jnp.float32),
        "decoder": {"w": w(HIDDEN, VOCAB),
                    "b": jnp.zeros((VOCAB,), jnp.float32)},
    }
    return p


# ------------------------------ Type_Learner.forward ---------------------------
def type_learner_forward(params, ind_map_src, ind_map_tgt, *,
                         input_ids, attention_mask, token_type_ids, position_ids,
                         labels=None, lm_mask=None, target=False, n_masked=None):
    b, s = input_ids.shape
    tokens = b * s
    ind_map = ind_map_tgt if target else ind_map_src
    n_types = int(ind_map.shape[0])
    with_loss = labels is not None

    # ---- plain-JAX glue: embedding gathers, masks, row/column selection ------
    we = jnp.take(params["word_emb"], input_ids, axis=0)
    pe = jnp.take(params["pos_emb"], position_ids, axis=0)
    te = jnp.take(params["type_emb"], token_type_ids, axis=0)
    x0 = (we + pe + te).reshape(tokens, HIDDEN).astype(jnp.float32)

    addmask = (1.0 - attention_mask.astype(jnp.float32)) * -10000.0   # (B, S)

    # TODO(synk): `logits[lm_mask > 0]` is data-dependent-shape boolean masking;
    # resolved here with a statically known masked-token count (n_masked).
    rows = jnp.nonzero(lm_mask.reshape(tokens) > 0, size=n_masked)[0]
    sel = jax.nn.one_hot(rows, tokens, dtype=jnp.float32)             # (N, T)

    dec_w = params["decoder"]["w"][:, ind_map]                        # (H, n_types)
    dec_b = params["decoder"]["b"][ind_map].reshape(1, -1)            # (1, n_types)

    L = params["layers"]
    inputs = [x0, addmask, sel,
              params["emb_ln_g"], params["emb_ln_b"],
              L["qkv_w"], L["qkv_b"], L["o_w"], L["o_b"],
              L["ln1_g"], L["ln1_b"],
              L["f1_w"], L["f1_b"], L["f2_w"], L["f2_b"],
              L["ln2_g"], L["ln2_b"],
              params["mlm_w"], params["mlm_b"],
              params["mlm_ln_g"], params["mlm_ln_b"],
              dec_w, dec_b]

    out_shapes = [jax.ShapeDtypeStruct((n_masked, n_types), jnp.float32)]
    out_specs = [_VMEM]
    if with_loss:
        inputs.append(labels.astype(jnp.int32).reshape(n_masked, 1))
        out_shapes.append(jax.ShapeDtypeStruct((1, 1), jnp.float32))
        out_specs.append(_SMEM)

    kernel = _make_fused_kernel(b, s, n_masked, n_types, with_loss)

    outs = pl.pallas_call(
        kernel,
        out_shape=tuple(out_shapes),
        in_specs=[_VMEM] * len(inputs),
        out_specs=tuple(out_specs),
        scratch_shapes=[pltpu.VMEM((tokens, 3 * HIDDEN), jnp.float32),  # qkv slab
                        pltpu.VMEM((tokens, HIDDEN), jnp.float32)],     # attn ctx
    )(*inputs)

    if with_loss:
        type_logits, loss = outs
        return loss[0, 0], type_logits
    return (outs[0],)


# ------------------------------------ main -------------------------------------
if __name__ == "__main__":
    key = jax.random.PRNGKey(0)
    kp, k1 = jax.random.split(key, 2)

    params = init_params(kp)

    B, S = 2, 8
    input_ids = jax.random.randint(k1, (B, S), 0, VOCAB, dtype=jnp.int32)
    attention_mask = jnp.ones((B, S), jnp.int32)
    token_type_ids = jnp.zeros((B, S), jnp.int32)
    position_ids = jnp.broadcast_to(jnp.arange(S, dtype=jnp.int32), (B, S))

    # two masked positions per example -> 4 masked tokens total
    lm_mask = jnp.zeros((B, S), jnp.int32)
    lm_mask = lm_mask.at[0, 1].set(1).at[0, 3].set(1).at[1, 2].set(1).at[1, 5].set(1)
    N_MASKED = 4
    labels = jnp.array([0, 3, 5, 7], jnp.int32)

    # label -> vocab index maps (distinct vocab ids)
    ind_map_src = jnp.array([3, 17, 29, 42, 55, 68, 77, 101], jnp.int32)
    ind_map_tgt = jnp.array([5, 11, 23, 37, 49, 63, 88, 120], jnp.int32)

    loss, type_logits = type_learner_forward(
        params, ind_map_src, ind_map_tgt,
        input_ids=input_ids, attention_mask=attention_mask,
        token_type_ids=token_type_ids, position_ids=position_ids,
        labels=labels, lm_mask=lm_mask, target=False, n_masked=N_MASKED)

    jax.block_until_ready((loss, type_logits))
    assert type_logits.shape == (N_MASKED, N_TYPES)
    assert bool(jnp.isfinite(loss))
    assert bool(jnp.all(jnp.isfinite(type_logits)))
    print("KERNEL_OK")
</pallas_src>

<mosaic_0001>
module attributes {stable_mosaic.version = 11 : i64} {
  func.func @kernel(%arg0: memref<16x32xf32, #tpu.memory_space<vmem>>, %arg1: memref<2x8xf32, #tpu.memory_space<vmem>>, %arg2: memref<4x16xf32, #tpu.memory_space<vmem>>, %arg3: memref<1x32xf32, #tpu.memory_space<vmem>>, %arg4: memref<1x32xf32, #tpu.memory_space<vmem>>, %arg5: memref<2x32x96xf32, #tpu.memory_space<vmem>>, %arg6: memref<2x1x96xf32, #tpu.memory_space<vmem>>, %arg7: memref<2x32x32xf32, #tpu.memory_space<vmem>>, %arg8: memref<2x1x32xf32, #tpu.memory_space<vmem>>, %arg9: memref<2x1x32xf32, #tpu.memory_space<vmem>>, %arg10: memref<2x1x32xf32, #tpu.memory_space<vmem>>, %arg11: memref<2x32x64xf32, #tpu.memory_space<vmem>>, %arg12: memref<2x1x64xf32, #tpu.memory_space<vmem>>, %arg13: memref<2x64x32xf32, #tpu.memory_space<vmem>>, %arg14: memref<2x1x32xf32, #tpu.memory_space<vmem>>, %arg15: memref<2x1x32xf32, #tpu.memory_space<vmem>>, %arg16: memref<2x1x32xf32, #tpu.memory_space<vmem>>, %arg17: memref<32x32xf32, #tpu.memory_space<vmem>>, %arg18: memref<1x32xf32, #tpu.memory_space<vmem>>, %arg19: memref<1x32xf32, #tpu.memory_space<vmem>>, %arg20: memref<1x32xf32, #tpu.memory_space<vmem>>, %arg21: memref<32x8xf32, #tpu.memory_space<vmem>>, %arg22: memref<1x8xf32, #tpu.memory_space<vmem>>, %arg23: memref<4x1xi32, #tpu.memory_space<vmem>>, %arg24: memref<4x8xf32, #tpu.memory_space<vmem>>, %arg25: memref<1x1xf32, #tpu.memory_space<smem>>, %arg26: memref<16x96xf32, #tpu.memory_space<vmem>>, %arg27: memref<16x32xf32, #tpu.memory_space<vmem>>) attributes {dimension_semantics = [], scalar_prefetch = 0 : i64, scratch_operands = 2 : i64, tpu.core_type = #tpu.core_type<tc>} {
    %c0 = arith.constant 0 : index
    %c0_0 = arith.constant 0 : index
    %0 = vector.load %arg0[%c0, %c0_0] : memref<16x32xf32, #tpu.memory_space<vmem>>, vector<16x32xf32>
    %c0_1 = arith.constant 0 : index
    %c0_2 = arith.constant 0 : index
    %1 = vector.load %arg3[%c0_1, %c0_2] : memref<1x32xf32, #tpu.memory_space<vmem>>, vector<1x32xf32>
    %c0_3 = arith.constant 0 : index
    %c0_4 = arith.constant 0 : index
    %2 = vector.load %arg4[%c0_3, %c0_4] : memref<1x32xf32, #tpu.memory_space<vmem>>, vector<1x32xf32>
    %cst = arith.constant dense<0.000000e+00> : vector<16xf32>
    %3 = vector.multi_reduction <add>, %0, %cst [1] : vector<16x32xf32> to vector<16xf32>
    %4 = vector.shape_cast %3 : vector<16xf32> to vector<16x1xf32>
    %cst_5 = arith.constant 3.200000e+01 : f32
    %5 = vector.broadcast %cst_5 : f32 to vector<16x1xf32>
    %6 = arith.divf %4, %5 : vector<16x1xf32>
    %7 = vector.broadcast %6 : vector<16x1xf32> to vector<16x32xf32>
    %8 = arith.subf %0, %7 : vector<16x32xf32>
    %9 = arith.mulf %8, %8 : vector<16x32xf32>
    %cst_6 = arith.constant dense<0.000000e+00> : vector<16xf32>
    %10 = vector.multi_reduction <add>, %9, %cst_6 [1] : vector<16x32xf32> to vector<16xf32>
    %11 = vector.shape_cast %10 : vector<16xf32> to vector<16x1xf32>
    %cst_7 = arith.constant 3.200000e+01 : f32
    %12 = vector.broadcast %cst_7 : f32 to vector<16x1xf32>
    %13 = arith.divf %11, %12 : vector<16x1xf32>
    %cst_8 = arith.constant 9.99999996E-13 : f32
    %14 = vector.broadcast %cst_8 : f32 to vector<16x1xf32>
    %15 = arith.addf %13, %14 : vector<16x1xf32>
    %16 = math.rsqrt %15 : vector<16x1xf32>
    %17 = vector.broadcast %16 : vector<16x1xf32> to vector<16x32xf32>
    %18 = arith.mulf %8, %17 : vector<16x32xf32>
    %19 = vector.broadcast %1 : vector<1x32xf32> to vector<16x32xf32>
    %20 = arith.mulf %18, %19 : vector<16x32xf32>
    %21 = vector.broadcast %2 : vector<1x32xf32> to vector<16x32xf32>
    %22 = arith.addf %20, %21 : vector<16x32xf32>
    %c0_9 = arith.constant 0 : index
    %c0_10 = arith.constant 0 : index
    %c0_11 = arith.constant 0 : index
    %23 = vector.load %arg5[%c0_9, %c0_10, %c0_11] : memref<2x32x96xf32, #tpu.memory_space<vmem>>, vector<1x32x96xf32>
    %24 = vector.shape_cast %23 : vector<1x32x96xf32> to vector<32x96xf32>
    %cst_12 = arith.constant dense<0.000000e+00> : vector<16x96xf32>
    %25 = tpu.matmul %22, %24, %cst_12 {dimension_numbers = #tpu.dot_dimension_numbers<[1], [0], [0], [1], [0, 0, 1, 1], [], []>} : vector<16x32xf32>, vector<32x96xf32>, vector<16x96xf32> -> vector<16x96xf32>
    %c0_13 = arith.constant 0 : index
    %c0_14 = arith.constant 0 : index
    %c0_15 = arith.constant 0 : index
    %26 = vector.load %arg6[%c0_13, %c0_14, %c0_15] : memref<2x1x96xf32, #tpu.memory_space<vmem>>, vector<1x1x96xf32>
    %27 = vector.shape_cast %26 : vector<1x1x96xf32> to vector<1x96xf32>
    %28 = vector.broadcast %27 : vector<1x96xf32> to vector<16x96xf32>
    %29 = arith.addf %25, %28 : vector<16x96xf32>
    %c0_16 = arith.constant 0 : index
    %c0_17 = arith.constant 0 : index
    %30 = vector.load %arg26[%c0_16, %c0_17] : memref<16x96xf32, #tpu.memory_space<vmem>>, vector<16x96xf32>
    tpu.vector_store %arg26[%c0_16, %c0_17], %29 {strides = array<i32>} : memref<16x96xf32, #tpu.memory_space<vmem>>, vector<16x96xf32>,
    %c0_18 = arith.constant 0 : index
    %c0_19 = arith.constant 0 : index
    %31 = vector.load %arg1[%c0_18, %c0_19] : memref<2x8xf32, #tpu.memory_space<vmem>>, vector<1x8xf32>
    %c0_20 = arith.constant 0 : index
    %c0_21 = arith.constant 0 : index
    %32 = vector.load %arg26[%c0_20, %c0_21] : memref<16x96xf32, #tpu.memory_space<vmem>>, vector<8x16xf32>
    %c0_22 = arith.constant 0 : index
    %c32 = arith.constant 32 : index
    %33 = vector.load %arg26[%c0_22, %c32] : memref<16x96xf32, #tpu.memory_space<vmem>>, vector<8x16xf32>
    %c0_23 = arith.constant 0 : index
    %c64 = arith.constant 64 : index
    %34 = vector.load %arg26[%c0_23, %c64] : memref<16x96xf32, #tpu.memory_space<vmem>>, vector<8x16xf32>
    %cst_24 = arith.constant dense<0.000000e+00> : vector<8x8xf32>
    %35 = tpu.matmul %32, %33, %cst_24 {dimension_numbers = #tpu.dot_dimension_numbers<[1], [1], [0], [0], [0, 0, 1, 0], [], []>} : vector<8x16xf32>, vector<8x16xf32>, vector<8x8xf32> -> vector<8x8xf32>
    %cst_25 = arith.constant 2.500000e-01 : f32
    %36 = vector.broadcast %cst_25 : f32 to vector<8x8xf32>
    %37 = arith.mulf %35, %36 : vector<8x8xf32>
    %38 = vector.broadcast %31 : vector<1x8xf32> to vector<8x8xf32>
    %39 = arith.addf %37, %38 : vector<8x8xf32>
    %cst_26 = arith.constant dense<0xFF800000> : vector<8xf32>
    %40 = vector.multi_reduction <maximumf>, %39, %cst_26 [1] : vector<8x8xf32> to vector<8xf32>
    %41 = vector.shape_cast %40 : vector<8xf32> to vector<8x1xf32>
    %42 = vector.broadcast %41 : vector<8x1xf32> to vector<8x8xf32>
    %43 = arith.subf %39, %42 : vector<8x8xf32>
    %44 = math.exp %43 : vector<8x8xf32>
    %cst_27 = arith.constant dense<0.000000e+00> : vector<8xf32>
    %45 = vector.multi_reduction <add>, %44, %cst_27 [1] : vector<8x8xf32> to vector<8xf32>
    %46 = vector.shape_cast %45 : vector<8xf32> to vector<8x1xf32>
    %47 = tpu.reciprocal %46 {approx = true} : vector<8x1xf32> -> vector<8x1xf32>
    %48 = vector.broadcast %47 : vector<8x1xf32> to vector<8x8xf32>
    %49 = arith.mulf %44, %48 : vector<8x8xf32>
    %cst_28 = arith.constant dense<0.000000e+00> : vector<8x16xf32>
    %50 = tpu.matmul %49, %34, %cst_28 {dimension_numbers = #tpu.dot_dimension_numbers<[1], [0], [0], [1], [0, 0, 1, 1], [], []>} : vector<8x8xf32>, vector<8x16xf32>, vector<8x16xf32> -> vector<8x16xf32>
    %c0_29 = arith.constant 0 : index
    %c0_30 = arith.constant 0 : index
    %51 = vector.load %arg27[%c0_29, %c0_30] : memref<16x32xf32, #tpu.memory_space<vmem>>, vector<8x16xf32>
    tpu.vector_store %arg27[%c0_29, %c0_30], %50 {strides = array<i32>} : memref<16x32xf32, #tpu.memory_space<vmem>>, vector<8x16xf32>,
    %c0_31 = arith.constant 0 : index
    %c16 = arith.constant 16 : index
    %52 = vector.load %arg26[%c0_31, %c16] : memref<16x96xf32, #tpu.memory_space<vmem>>, vector<8x16xf32>
    %c0_32 = arith.constant 0 : index
    %c48 = arith.constant 48 : index
    %53 = vector.load %arg26[%c0_32, %c48] : memref<16x96xf32, #tpu.memory_space<vmem>>, vector<8x16xf32>
    %c0_33 = arith.constant 0 : index
    %c80 = arith.constant 80 : index
    %54 = vector.load %arg26[%c0_33, %c80] : memref<16x96xf32, #tpu.memory_space<vmem>>, vector<8x16xf32>
    %cst_34 = arith.constant dense<0.000000e+00> : vector<8x8xf32>
    %55 = tpu.matmul %52, %53, %cst_34 {dimension_numbers = #tpu.dot_dimension_numbers<[1], [1], [0], [0], [0, 0, 1, 0], [], []>} : vector<8x16xf32>, vector<8x16xf32>, vector<8x8xf32> -> vector<8x8xf32>
    %cst_35 = arith.constant 2.500000e-01 : f32
    %56 = vector.broadcast %cst_35 : f32 to vector<8x8xf32>
    %57 = arith.mulf %55, %56 : vector<8x8xf32>
    %58 = vector.broadcast %31 : vector<1x8xf32> to vector<8x8xf32>
    %59 = arith.addf %57, %58 : vector<8x8xf32>
    %cst_36 = arith.constant dense<0xFF800000> : vector<8xf32>
    %60 = vector.multi_reduction <maximumf>, %59, %cst_36 [1] : vector<8x8xf32> to vector<8xf32>
    %61 = vector.shape_cast %60 : vector<8xf32> to vector<8x1xf32>
    %62 = vector.broadcast %61 : vector<8x1xf32> to vector<8x8xf32>
    %63 = arith.subf %59, %62 : vector<8x8xf32>
    %64 = math.exp %63 : vector<8x8xf32>
    %cst_37 = arith.constant dense<0.000000e+00> : vector<8xf32>
    %65 = vector.multi_reduction <add>, %64, %cst_37 [1] : vector<8x8xf32> to vector<8xf32>
    %66 = vector.shape_cast %65 : vector<8xf32> to vector<8x1xf32>
    %67 = tpu.reciprocal %66 {approx = true} : vector<8x1xf32> -> vector<8x1xf32>
    %68 = vector.broadcast %67 : vector<8x1xf32> to vector<8x8xf32>
    %69 = arith.mulf %64, %68 : vector<8x8xf32>
    %cst_38 = arith.constant dense<0.000000e+00> : vector<8x16xf32>
    %70 = tpu.matmul %69, %54, %cst_38 {dimension_numbers = #tpu.dot_dimension_numbers<[1], [0], [0], [1], [0, 0, 1, 1], [], []>} : vector<8x8xf32>, vector<8x16xf32>, vector<8x16xf32> -> vector<8x16xf32>
    %c0_39 = arith.constant 0 : index
    %c16_40 = arith.constant 16 : index
    %71 = vector.load %arg27[%c0_39, %c16_40] : memref<16x32xf32, #tpu.memory_space<vmem>>, vector<8x16xf32>
    tpu.vector_store %arg27[%c0_39, %c16_40], %70 {strides = array<i32>} : memref<16x32xf32, #tpu.memory_space<vmem>>, vector<8x16xf32>,
    %c1 = arith.constant 1 : index
    %c0_41 = arith.constant 0 : index
    %72 = vector.load %arg1[%c1, %c0_41] : memref<2x8xf32, #tpu.memory_space<vmem>>, vector<1x8xf32>
    %c8 = arith.constant 8 : index
    %c0_42 = arith.constant 0 : index
    %73 = vector.load %arg26[%c8, %c0_42] : memref<16x96xf32, #tpu.memory_space<vmem>>, vector<8x16xf32>
    %c8_43 = arith.constant 8 : index
    %c32_44 = arith.constant 32 : index
    %74 = vector.load %arg26[%c8_43, %c32_44] : memref<16x96xf32, #tpu.memory_space<vmem>>, vector<8x16xf32>
    %c8_45 = arith.constant 8 : index
    %c64_46 = arith.constant 64 : index
    %75 = vector.load %arg26[%c8_45, %c64_46] : memref<16x96xf32, #tpu.memory_space<vmem>>, vector<8x16xf32>
    %cst_47 = arith.constant dense<0.000000e+00> : vector<8x8xf32>
    %76 = tpu.matmul %73, %74, %cst_47 {dimension_numbers = #tpu.dot_dimension_numbers<[1], [1], [0], [0], [0, 0, 1, 0], [], []>} : vector<8x16xf32>, vector<8x16xf32>, vector<8x8xf32> -> vector<8x8xf32>
    %cst_48 = arith.constant 2.500000e-01 : f32
    %77 = vector.broadcast %cst_48 : f32 to vector<8x8xf32>
    %78 = arith.mulf %76, %77 : vector<8x8xf32>
    %79 = vector.broadcast %72 : vector<1x8xf32> to vector<8x8xf32>
    %80 = arith.addf %78, %79 : vector<8x8xf32>
    %cst_49 = arith.constant dense<0xFF800000> : vector<8xf32>
    %81 = vector.multi_reduction <maximumf>, %80, %cst_49 [1] : vector<8x8xf32> to vector<8xf32>
    %82 = vector.shape_cast %81 : vector<8xf32> to vector<8x1xf32>
    %83 = vector.broadcast %82 : vector<8x1xf32> to vector<8x8xf32>
    %84 = arith.subf %80, %83 : vector<8x8xf32>
    %85 = math.exp %84 : vector<8x8xf32>
    %cst_50 = arith.constant dense<0.000000e+00> : vector<8xf32>
    %86 = vector.multi_reduction <add>, %85, %cst_50 [1] : vector<8x8xf32> to vector<8xf32>
    %87 = vector.shape_cast %86 : vector<8xf32> to vector<8x1xf32>
    %88 = tpu.reciprocal %87 {approx = true} : vector<8x1xf32> -> vector<8x1xf32>
    %89 = vector.broadcast %88 : vector<8x1xf32> to vector<8x8xf32>
    %90 = arith.mulf %85, %89 : vector<8x8xf32>
    %cst_51 = arith.constant dense<0.000000e+00> : vector<8x16xf32>
    %91 = tpu.matmul %90, %75, %cst_51 {dimension_numbers = #tpu.dot_dimension_numbers<[1], [0], [0], [1], [0, 0, 1, 1], [], []>} : vector<8x8xf32>, vector<8x16xf32>, vector<8x16xf32> -> vector<8x16xf32>
    %c8_52 = arith.constant 8 : index
    %c0_53 = arith.constant 0 : index
    %92 = vector.load %arg27[%c8_52, %c0_53] : memref<16x32xf32, #tpu.memory_space<vmem>>, vector<8x16xf32>
    tpu.vector_store %arg27[%c8_52, %c0_53], %91 {strides = array<i32>} : memref<16x32xf32, #tpu.memory_space<vmem>>, vector<8x16xf32>,
    %c8_54 = arith.constant 8 : index
    %c16_55 = arith.constant 16 : index
    %93 = vector.load %arg26[%c8_54, %c16_55] : memref<16x96xf32, #tpu.memory_space<vmem>>, vector<8x16xf32>
    %c8_56 = arith.constant 8 : index
    %c48_57 = arith.constant 48 : index
    %94 = vector.load %arg26[%c8_56, %c48_57] : memref<16x96xf32, #tpu.memory_space<vmem>>, vector<8x16xf32>
    %c8_58 = arith.constant 8 : index
    %c80_59 = arith.constant 80 : index
    %95 = vector.load %arg26[%c8_58, %c80_59] : memref<16x96xf32, #tpu.memory_space<vmem>>, vector<8x16xf32>
    %cst_60 = arith.constant dense<0.000000e+00> : vector<8x8xf32>
    %96 = tpu.matmul %93, %94, %cst_60 {dimension_numbers = #tpu.dot_dimension_numbers<[1], [1], [0], [0], [0, 0, 1, 0], [], []>} : vector<8x16xf32>, vector<8x16xf32>, vector<8x8xf32> -> vector<8x8xf32>
    %cst_61 = arith.constant 2.500000e-01 : f32
    %97 = vector.broadcast %cst_61 : f32 to vector<8x8xf32>
    %98 = arith.mulf %96, %97 : vector<8x8xf32>
    %99 = vector.broadcast %72 : vector<1x8xf32> to vector<8x8xf32>
    %100 = arith.addf %98, %99 : vector<8x8xf32>
    %cst_62 = arith.constant dense<0xFF800000> : vector<8xf32>
    %101 = vector.multi_reduction <maximumf>, %100, %cst_62 [1] : vector<8x8xf32> to vector<8xf32>
    %102 = vector.shape_cast %101 : vector<8xf32> to vector<8x1xf32>
    %103 = vector.broadcast %102 : vector<8x1xf32> to vector<8x8xf32>
    %104 = arith.subf %100, %103 : vector<8x8xf32>
    %105 = math.exp %104 : vector<8x8xf32>
    %cst_63 = arith.constant dense<0.000000e+00> : vector<8xf32>
    %106 = vector.multi_reduction <add>, %105, %cst_63 [1] : vector<8x8xf32> to vector<8xf32>
    %107 = vector.shape_cast %106 : vector<8xf32> to vector<8x1xf32>
    %108 = tpu.reciprocal %107 {approx = true} : vector<8x1xf32> -> vector<8x1xf32>
    %109 = vector.broadcast %108 : vector<8x1xf32> to vector<8x8xf32>
    %110 = arith.mulf %105, %109 : vector<8x8xf32>
    %cst_64 = arith.constant dense<0.000000e+00> : vector<8x16xf32>
    %111 = tpu.matmul %110, %95, %cst_64 {dimension_numbers = #tpu.dot_dimension_numbers<[1], [0], [0], [1], [0, 0, 1, 1], [], []>} : vector<8x8xf32>, vector<8x16xf32>, vector<8x16xf32> -> vector<8x16xf32>
    %c8_65 = arith.constant 8 : index
    %c16_66 = arith.constant 16 : index
    %112 = vector.load %arg27[%c8_65, %c16_66] : memref<16x32xf32, #tpu.memory_space<vmem>>, vector<8x16xf32>
    tpu.vector_store %arg27[%c8_65, %c16_66], %111 {strides = array<i32>} : memref<16x32xf32, #tpu.memory_space<vmem>>, vector<8x16xf32>,
    %c0_67 = arith.constant 0 : index
    %c0_68 = arith.constant 0 : index
    %113 = vector.load %arg27[%c0_67, %c0_68] : memref<16x32xf32, #tpu.memory_space<vmem>>, vector<16x32xf32>
    %c0_69 = arith.constant 0 : index
    %c0_70 = arith.constant 0 : index
    %c0_71 = arith.constant 0 : index
    %114 = vector.load %arg7[%c0_69, %c0_70, %c0_71] : memref<2x32x32xf32, #tpu.memory_space<vmem>>, vector<1x32x32xf32>
    %115 = vector.shape_cast %114 : vector<1x32x32xf32> to vector<32x32xf32>
    %cst_72 = arith.constant dense<0.000000e+00> : vector<16x32xf32>
    %116 = tpu.matmul %113, %115, %cst_72 {dimension_numbers = #tpu.dot_dimension_numbers<[1], [0], [0], [1], [0, 0, 1, 1], [], []>} : vector<16x32xf32>, vector<32x32xf32>, vector<16x32xf32> -> vector<16x32xf32>
    %c0_73 = arith.constant 0 : index
    %c0_74 = arith.constant 0 : index
    %c0_75 = arith.constant 0 : index
    %117 = vector.load %arg8[%c0_73, %c0_74, %c0_75] : memref<2x1x32xf32, #tpu.memory_space<vmem>>, vector<1x1x32xf32>
    %118 = vector.shape_cast %117 : vector<1x1x32xf32> to vector<1x32xf32>
    %119 = vector.broadcast %118 : vector<1x32xf32> to vector<16x32xf32>
    %120 = arith.addf %116, %119 : vector<16x32xf32>
    %121 = arith.addf %120, %22 : vector<16x32xf32>
    %c0_76 = arith.constant 0 : index
    %c0_77 = arith.constant 0 : index
    %c0_78 = arith.constant 0 : index
    %122 = vector.load %arg9[%c0_76, %c0_77, %c0_78] : memref<2x1x32xf32, #tpu.memory_space<vmem>>, vector<1x1x32xf32>
    %123 = vector.shape_cast %122 : vector<1x1x32xf32> to vector<1x32xf32>
    %c0_79 = arith.constant 0 : index
    %c0_80 = arith.constant 0 : index
    %c0_81 = arith.constant 0 : index
    %124 = vector.load %arg10[%c0_79, %c0_80, %c0_81] : memref<2x1x32xf32, #tpu.memory_space<vmem>>, vector<1x1x32xf32>
    %125 = vector.shape_cast %124 : vector<1x1x32xf32> to vector<1x32xf32>
    %cst_82 = arith.constant dense<0.000000e+00> : vector<16xf32>
    %126 = vector.multi_reduction <add>, %121, %cst_82 [1] : vector<16x32xf32> to vector<16xf32>
    %127 = vector.shape_cast %126 : vector<16xf32> to vector<16x1xf32>
    %cst_83 = arith.constant 3.200000e+01 : f32
    %128 = vector.broadcast %cst_83 : f32 to vector<16x1xf32>
    %129 = arith.divf %127, %128 : vector<16x1xf32>
    %130 = vector.broadcast %129 : vector<16x1xf32> to vector<16x32xf32>
    %131 = arith.subf %121, %130 : vector<16x32xf32>
    %132 = arith.mulf %131, %131 : vector<16x32xf32>
    %cst_84 = arith.constant dense<0.000000e+00> : vector<16xf32>
    %133 = vector.multi_reduction <add>, %132, %cst_84 [1] : vector<16x32xf32> to vector<16xf32>
    %134 = vector.shape_cast %133 : vector<16xf32> to vector<16x1xf32>
    %cst_85 = arith.constant 3.200000e+01 : f32
    %135 = vector.broadcast %cst_85 : f32 to vector<16x1xf32>
    %136 = arith.divf %134, %135 : vector<16x1xf32>
    %cst_86 = arith.constant 9.99999996E-13 : f32
    %137 = vector.broadcast %cst_86 : f32 to vector<16x1xf32>
    %138 = arith.addf %136, %137 : vector<16x1xf32>
    %139 = math.rsqrt %138 : vector<16x1xf32>
    %140 = vector.broadcast %139 : vector<16x1xf32> to vector<16x32xf32>
    %141 = arith.mulf %131, %140 : vector<16x32xf32>
    %142 = vector.broadcast %123 : vector<1x32xf32> to vector<16x32xf32>
    %143 = arith.mulf %141, %142 : vector<16x32xf32>
    %144 = vector.broadcast %125 : vector<1x32xf32> to vector<16x32xf32>
    %145 = arith.addf %143, %144 : vector<16x32xf32>
    %c0_87 = arith.constant 0 : index
    %c0_88 = arith.constant 0 : index
    %c0_89 = arith.constant 0 : index
    %146 = vector.load %arg11[%c0_87, %c0_88, %c0_89] : memref<2x32x64xf32, #tpu.memory_space<vmem>>, vector<1x32x64xf32>
    %147 = vector.shape_cast %146 : vector<1x32x64xf32> to vector<32x64xf32>
    %cst_90 = arith.constant dense<0.000000e+00> : vector<16x64xf32>
    %148 = tpu.matmul %145, %147, %cst_90 {dimension_numbers = #tpu.dot_dimension_numbers<[1], [0], [0], [1], [0, 0, 1, 1], [], []>} : vector<16x32xf32>, vector<32x64xf32>, vector<16x64xf32> -> vector<16x64xf32>
    %c0_91 = arith.constant 0 : index
    %c0_92 = arith.constant 0 : index
    %c0_93 = arith.constant 0 : index
    %149 = vector.load %arg12[%c0_91, %c0_92, %c0_93] : memref<2x1x64xf32, #tpu.memory_space<vmem>>, vector<1x1x64xf32>
    %150 = vector.shape_cast %149 : vector<1x1x64xf32> to vector<1x64xf32>
    %151 = vector.broadcast %150 : vector<1x64xf32> to vector<16x64xf32>
    %152 = arith.addf %148, %151 : vector<16x64xf32>
    %cst_94 = arith.constant 5.000000e-01 : f32
    %153 = vector.broadcast %cst_94 : f32 to vector<16x64xf32>
    %154 = arith.mulf %153, %152 : vector<16x64xf32>
    %cst_95 = arith.constant 4.471500e-02 : f32
    %155 = vector.broadcast %cst_95 : f32 to vector<16x64xf32>
    %156 = arith.mulf %155, %152 : vector<16x64xf32>
    %157 = arith.mulf %156, %152 : vector<16x64xf32>
    %158 = arith.mulf %157, %152 : vector<16x64xf32>
    %159 = arith.addf %152, %158 : vector<16x64xf32>
    %cst_96 = arith.constant 0.797884583 : f32
    %160 = vector.broadcast %cst_96 : f32 to vector<16x64xf32>
    %161 = arith.mulf %160, %159 : vector<16x64xf32>
    %162 = math.tanh %161 : vector<16x64xf32>
    %cst_97 = arith.constant 1.000000e+00 : f32
    %163 = vector.broadcast %cst_97 : f32 to vector<16x64xf32>
    %164 = arith.addf %163, %162 : vector<16x64xf32>
    %165 = arith.mulf %154, %164 : vector<16x64xf32>
    %c0_98 = arith.constant 0 : index
    %c0_99 = arith.constant 0 : index
    %c0_100 = arith.constant 0 : index
    %166 = vector.load %arg13[%c0_98, %c0_99, %c0_100] : memref<2x64x32xf32, #tpu.memory_space<vmem>>, vector<1x64x32xf32>
    %167 = vector.shape_cast %166 : vector<1x64x32xf32> to vector<64x32xf32>
    %cst_101 = arith.constant dense<0.000000e+00> : vector<16x32xf32>
    %168 = tpu.matmul %165, %167, %cst_101 {dimension_numbers = #tpu.dot_dimension_numbers<[1], [0], [0], [1], [0, 0, 1, 1], [], []>} : vector<16x64xf32>, vector<64x32xf32>, vector<16x32xf32> -> vector<16x32xf32>
    %c0_102 = arith.constant 0 : index
    %c0_103 = arith.constant 0 : index
    %c0_104 = arith.constant 0 : index
    %169 = vector.load %arg14[%c0_102, %c0_103, %c0_104] : memref<2x1x32xf32, #tpu.memory_space<vmem>>, vector<1x1x32xf32>
    %170 = vector.shape_cast %169 : vector<1x1x32xf32> to vector<1x32xf32>
    %171 = vector.broadcast %170 : vector<1x32xf32> to vector<16x32xf32>
    %172 = arith.addf %168, %171 : vector<16x32xf32>
    %173 = arith.addf %172, %145 : vector<16x32xf32>
    %c0_105 = arith.constant 0 : index
    %c0_106 = arith.constant 0 : index
    %c0_107 = arith.constant 0 : index
    %174 = vector.load %arg15[%c0_105, %c0_106, %c0_107] : memref<2x1x32xf32, #tpu.memory_space<vmem>>, vector<1x1x32xf32>
    %175 = vector.shape_cast %174 : vector<1x1x32xf32> to vector<1x32xf32>
    %c0_108 = arith.constant 0 : index
    %c0_109 = arith.constant 0 : index
    %c0_110 = arith.constant 0 : index
    %176 = vector.load %arg16[%c0_108, %c0_109, %c0_110] : memref<2x1x32xf32, #tpu.memory_space<vmem>>, vector<1x1x32xf32>
    %177 = vector.shape_cast %176 : vector<1x1x32xf32> to vector<1x32xf32>
    %cst_111 = arith.constant dense<0.000000e+00> : vector<16xf32>
    %178 = vector.multi_reduction <add>, %173, %cst_111 [1] : vector<16x32xf32> to vector<16xf32>
    %179 = vector.shape_cast %178 : vector<16xf32> to vector<16x1xf32>
    %cst_112 = arith.constant 3.200000e+01 : f32
    %180 = vector.broadcast %cst_112 : f32 to vector<16x1xf32>
    %181 = arith.divf %179, %180 : vector<16x1xf32>
    %182 = vector.broadcast %181 : vector<16x1xf32> to vector<16x32xf32>
    %183 = arith.subf %173, %182 : vector<16x32xf32>
    %184 = arith.mulf %183, %183 : vector<16x32xf32>
    %cst_113 = arith.constant dense<0.000000e+00> : vector<16xf32>
    %185 = vector.multi_reduction <add>, %184, %cst_113 [1] : vector<16x32xf32> to vector<16xf32>
    %186 = vector.shape_cast %185 : vector<16xf32> to vector<16x1xf32>
    %cst_114 = arith.constant 3.200000e+01 : f32
    %187 = vector.broadcast %cst_114 : f32 to vector<16x1xf32>
    %188 = arith.divf %186, %187 : vector<16x1xf32>
    %cst_115 = arith.constant 9.99999996E-13 : f32
    %189 = vector.broadcast %cst_115 : f32 to vector<16x1xf32>
    %190 = arith.addf %188, %189 : vector<16x1xf32>
    %191 = math.rsqrt %190 : vector<16x1xf32>
    %192 = vector.broadcast %191 : vector<16x1xf32> to vector<16x32xf32>
    %193 = arith.mulf %183, %192 : vector<16x32xf32>
    %194 = vector.broadcast %175 : vector<1x32xf32> to vector<16x32xf32>
    %195 = arith.mulf %193, %194 : vector<16x32xf32>
    %196 = vector.broadcast %177 : vector<1x32xf32> to vector<16x32xf32>
    %197 = arith.addf %195, %196 : vector<16x32xf32>
    %c1_116 = arith.constant 1 : index
    %c0_117 = arith.constant 0 : index
    %c0_118 = arith.constant 0 : index
    %198 = vector.load %arg5[%c1_116, %c0_117, %c0_118] : memref<2x32x96xf32, #tpu.memory_space<vmem>>, vector<1x32x96xf32>
    %199 = vector.shape_cast %198 : vector<1x32x96xf32> to vector<32x96xf32>
    %cst_119 = arith.constant dense<0.000000e+00> : vector<16x96xf32>
    %200 = tpu.matmul %197, %199, %cst_119 {dimension_numbers = #tpu.dot_dimension_numbers<[1], [0], [0], [1], [0, 0, 1, 1], [], []>} : vector<16x32xf32>, vector<32x96xf32>, vector<16x96xf32> -> vector<16x96xf32>
    %c1_120 = arith.constant 1 : index
    %c0_121 = arith.constant 0 : index
    %c0_122 = arith.constant 0 : index
    %201 = vector.load %arg6[%c1_120, %c0_121, %c0_122] : memref<2x1x96xf32, #tpu.memory_space<vmem>>, vector<1x1x96xf32>
    %202 = vector.shape_cast %201 : vector<1x1x96xf32> to vector<1x96xf32>
    %203 = vector.broadcast %202 : vector<1x96xf32> to vector<16x96xf32>
    %204 = arith.addf %200, %203 : vector<16x96xf32>
    %c0_123 = arith.constant 0 : index
    %c0_124 = arith.constant 0 : index
    %205 = vector.load %arg26[%c0_123, %c0_124] : memref<16x96xf32, #tpu.memory_space<vmem>>, vector<16x96xf32>
    tpu.vector_store %arg26[%c0_123, %c0_124], %204 {strides = array<i32>} : memref<16x96xf32, #tpu.memory_space<vmem>>, vector<16x96xf32>,
    %c0_125 = arith.constant 0 : index
    %c0_126 = arith.constant 0 : index
    %206 = vector.load %arg1[%c0_125, %c0_126] : memref<2x8xf32, #tpu.memory_space<vmem>>, vector<1x8xf32>
    %c0_127 = arith.constant 0 : index
    %c0_128 = arith.constant 0 : index
    %207 = vector.load %arg26[%c0_127, %c0_128] : memref<16x96xf32, #tpu.memory_space<vmem>>, vector<8x16xf32>
    %c0_129 = arith.constant 0 : index
    %c32_130 = arith.constant 32 : index
    %208 = vector.load %arg26[%c0_129, %c32_130] : memref<16x96xf32, #tpu.memory_space<vmem>>, vector<8x16xf32>
    %c0_131 = arith.constant 0 : index
    %c64_132 = arith.constant 64 : index
    %209 = vector.load %arg26[%c0_131, %c64_132] : memref<16x96xf32, #tpu.memory_space<vmem>>, vector<8x16xf32>
    %cst_133 = arith.constant dense<0.000000e+00> : vector<8x8xf32>
    %210 = tpu.matmul %207, %208, %cst_133 {dimension_numbers = #tpu.dot_dimension_numbers<[1], [1], [0], [0], [0, 0, 1, 0], [], []>} : vector<8x16xf32>, vector<8x16xf32>, vector<8x8xf32> -> vector<8x8xf32>
    %cst_134 = arith.constant 2.500000e-01 : f32
    %211 = vector.broadcast %cst_134 : f32 to vector<8x8xf32>
    %212 = arith.mulf %210, %211 : vector<8x8xf32>
    %213 = vector.broadcast %206 : vector<1x8xf32> to vector<8x8xf32>
    %214 = arith.addf %212, %213 : vector<8x8xf32>
    %cst_135 = arith.constant dense<0xFF800000> : vector<8xf32>
    %215 = vector.multi_reduction <maximumf>, %214, %cst_135 [1] : vector<8x8xf32> to vector<8xf32>
    %216 = vector.shape_cast %215 : vector<8xf32> to vector<8x1xf32>
    %217 = vector.broadcast %216 : vector<8x1xf32> to vector<8x8xf32>
    %218 = arith.subf %214, %217 : vector<8x8xf32>
    %219 = math.exp %218 : vector<8x8xf32>
    %cst_136 = arith.constant dense<0.000000e+00> : vector<8xf32>
    %220 = vector.multi_reduction <add>, %219, %cst_136 [1] : vector<8x8xf32> to vector<8xf32>
    %221 = vector.shape_cast %220 : vector<8xf32> to vector<8x1xf32>
    %222 = tpu.reciprocal %221 {approx = true} : vector<8x1xf32> -> vector<8x1xf32>
    %223 = vector.broadcast %222 : vector<8x1xf32> to vector<8x8xf32>
    %224 = arith.mulf %219, %223 : vector<8x8xf32>
    %cst_137 = arith.constant dense<0.000000e+00> : vector<8x16xf32>
    %225 = tpu.matmul %224, %209, %cst_137 {dimension_numbers = #tpu.dot_dimension_numbers<[1], [0], [0], [1], [0, 0, 1, 1], [], []>} : vector<8x8xf32>, vector<8x16xf32>, vector<8x16xf32> -> vector<8x16xf32>
    %c0_138 = arith.constant 0 : index
    %c0_139 = arith.constant 0 : index
    %226 = vector.load %arg27[%c0_138, %c0_139] : memref<16x32xf32, #tpu.memory_space<vmem>>, vector<8x16xf32>
    tpu.vector_store %arg27[%c0_138, %c0_139], %225 {strides = array<i32>} : memref<16x32xf32, #tpu.memory_space<vmem>>, vector<8x16xf32>,
    %c0_140 = arith.constant 0 : index
    %c16_141 = arith.constant 16 : index
    %227 = vector.load %arg26[%c0_140, %c16_141] : memref<16x96xf32, #tpu.memory_space<vmem>>, vector<8x16xf32>
    %c0_142 = arith.constant 0 : index
    %c48_143 = arith.constant 48 : index
    %228 = vector.load %arg26[%c0_142, %c48_143] : memref<16x96xf32, #tpu.memory_space<vmem>>, vector<8x16xf32>
    %c0_144 = arith.constant 0 : index
    %c80_145 = arith.constant 80 : index
    %229 = vector.load %arg26[%c0_144, %c80_145] : memref<16x96xf32, #tpu.memory_space<vmem>>, vector<8x16xf32>
    %cst_146 = arith.constant dense<0.000000e+00> : vector<8x8xf32>
    %230 = tpu.matmul %227, %228, %cst_146 {dimension_numbers = #tpu.dot_dimension_numbers<[1], [1], [0], [0], [0, 0, 1, 0], [], []>} : vector<8x16xf32>, vector<8x16xf32>, vector<8x8xf32> -> vector<8x8xf32>
    %cst_147 = arith.constant 2.500000e-01 : f32
    %231 = vector.broadcast %cst_147 : f32 to vector<8x8xf32>
    %232 = arith.mulf %230, %231 : vector<8x8xf32>
    %233 = vector.broadcast %206 : vector<1x8xf32> to vector<8x8xf32>
    %234 = arith.addf %232, %233 : vector<8x8xf32>
    %cst_148 = arith.constant dense<0xFF800000> : vector<8xf32>
    %235 = vector.multi_reduction <maximumf>, %234, %cst_148 [1] : vector<8x8xf32> to vector<8xf32>
    %236 = vector.shape_cast %235 : vector<8xf32> to vector<8x1xf32>
    %237 = vector.broadcast %236 : vector<8x1xf32> to vector<8x8xf32>
    %238 = arith.subf %234, %237 : vector<8x8xf32>
    %239 = math.exp %238 : vector<8x8xf32>
    %cst_149 = arith.constant dense<0.000000e+00> : vector<8xf32>
    %240 = vector.multi_reduction <add>, %239, %cst_149 [1] : vector<8x8xf32> to vector<8xf32>
    %241 = vector.shape_cast %240 : vector<8xf32> to vector<8x1xf32>
    %242 = tpu.reciprocal %241 {approx = true} : vector<8x1xf32> -> vector<8x1xf32>
    %243 = vector.broadcast %242 : vector<8x1xf32> to vector<8x8xf32>
    %244 = arith.mulf %239, %243 : vector<8x8xf32>
    %cst_150 = arith.constant dense<0.000000e+00> : vector<8x16xf32>
    %245 = tpu.matmul %244, %229, %cst_150 {dimension_numbers = #tpu.dot_dimension_numbers<[1], [0], [0], [1], [0, 0, 1, 1], [], []>} : vector<8x8xf32>, vector<8x16xf32>, vector<8x16xf32> -> vector<8x16xf32>
    %c0_151 = arith.constant 0 : index
    %c16_152 = arith.constant 16 : index
    %246 = vector.load %arg27[%c0_151, %c16_152] : memref<16x32xf32, #tpu.memory_space<vmem>>, vector<8x16xf32>
    tpu.vector_store %arg27[%c0_151, %c16_152], %245 {strides = array<i32>} : memref<16x32xf32, #tpu.memory_space<vmem>>, vector<8x16xf32>,
    %c1_153 = arith.constant 1 : index
    %c0_154 = arith.constant 0 : index
    %247 = vector.load %arg1[%c1_153, %c0_154] : memref<2x8xf32, #tpu.memory_space<vmem>>, vector<1x8xf32>
    %c8_155 = arith.constant 8 : index
    %c0_156 = arith.constant 0 : index
    %248 = vector.load %arg26[%c8_155, %c0_156] : memref<16x96xf32, #tpu.memory_space<vmem>>, vector<8x16xf32>
    %c8_157 = arith.constant 8 : index
    %c32_158 = arith.constant 32 : index
    %249 = vector.load %arg26[%c8_157, %c32_158] : memref<16x96xf32, #tpu.memory_space<vmem>>, vector<8x16xf32>
    %c8_159 = arith.constant 8 : index
    %c64_160 = arith.constant 64 : index
    %250 = vector.load %arg26[%c8_159, %c64_160] : memref<16x96xf32, #tpu.memory_space<vmem>>, vector<8x16xf32>
    %cst_161 = arith.constant dense<0.000000e+00> : vector<8x8xf32>
    %251 = tpu.matmul %248, %249, %cst_161 {dimension_numbers = #tpu.dot_dimension_numbers<[1], [1], [0], [0], [0, 0, 1, 0], [], []>} : vector<8x16xf32>, vector<8x16xf32>, vector<8x8xf32> -> vector<8x8xf32>
    %cst_162 = arith.constant 2.500000e-01 : f32
    %252 = vector.broadcast %cst_162 : f32 to vector<8x8xf32>
    %253 = arith.mulf %251, %252 : vector<8x8xf32>
    %254 = vector.broadcast %247 : vector<1x8xf32> to vector<8x8xf32>
    %255 = arith.addf %253, %254 : vector<8x8xf32>
    %cst_163 = arith.constant dense<0xFF800000> : vector<8xf32>
    %256 = vector.multi_reduction <maximumf>, %255, %cst_163 [1] : vector<8x8xf32> to vector<8xf32>
    %257 = vector.shape_cast %256 : vector<8xf32> to vector<8x1xf32>
    %258 = vector.broadcast %257 : vector<8x1xf32> to vector<8x8xf32>
    %259 = arith.subf %255, %258 : vector<8x8xf32>
    %260 = math.exp %259 : vector<8x8xf32>
    %cst_164 = arith.constant dense<0.000000e+00> : vector<8xf32>
    %261 = vector.multi_reduction <add>, %260, %cst_164 [1] : vector<8x8xf32> to vector<8xf32>
    %262 = vector.shape_cast %261 : vector<8xf32> to vector<8x1xf32>
    %263 = tpu.reciprocal %262 {approx = true} : vector<8x1xf32> -> vector<8x1xf32>
    %264 = vector.broadcast %263 : vector<8x1xf32> to vector<8x8xf32>
    %265 = arith.mulf %260, %264 : vector<8x8xf32>
    %cst_165 = arith.constant dense<0.000000e+00> : vector<8x16xf32>
    %266 = tpu.matmul %265, %250, %cst_165 {dimension_numbers = #tpu.dot_dimension_numbers<[1], [0], [0], [1], [0, 0, 1, 1], [], []>} : vector<8x8xf32>, vector<8x16xf32>, vector<8x16xf32> -> vector<8x16xf32>
    %c8_166 = arith.constant 8 : index
    %c0_167 = arith.constant 0 : index
    %267 = vector.load %arg27[%c8_166, %c0_167] : memref<16x32xf32, #tpu.memory_space<vmem>>, vector<8x16xf32>
    tpu.vector_store %arg27[%c8_166, %c0_167], %266 {strides = array<i32>} : memref<16x32xf32, #tpu.memory_space<vmem>>, vector<8x16xf32>,
    %c8_168 = arith.constant 8 : index
    %c16_169 = arith.constant 16 : index
    %268 = vector.load %arg26[%c8_168, %c16_169] : memref<16x96xf32, #tpu.memory_space<vmem>>, vector<8x16xf32>
    %c8_170 = arith.constant 8 : index
    %c48_171 = arith.constant 48 : index
    %269 = vector.load %arg26[%c8_170, %c48_171] : memref<16x96xf32, #tpu.memory_space<vmem>>, vector<8x16xf32>
    %c8_172 = arith.constant 8 : index
    %c80_173 = arith.constant 80 : index
    %270 = vector.load %arg26[%c8_172, %c80_173] : memref<16x96xf32, #tpu.memory_space<vmem>>, vector<8x16xf32>
    %cst_174 = arith.constant dense<0.000000e+00> : vector<8x8xf32>
    %271 = tpu.matmul %268, %269, %cst_174 {dimension_numbers = #tpu.dot_dimension_numbers<[1], [1], [0], [0], [0, 0, 1, 0], [], []>} : vector<8x16xf32>, vector<8x16xf32>, vector<8x8xf32> -> vector<8x8xf32>
    %cst_175 = arith.constant 2.500000e-01 : f32
    %272 = vector.broadcast %cst_175 : f32 to vector<8x8xf32>
    %273 = arith.mulf %271, %272 : vector<8x8xf32>
    %274 = vector.broadcast %247 : vector<1x8xf32> to vector<8x8xf32>
    %275 = arith.addf %273, %274 : vector<8x8xf32>
    %cst_176 = arith.constant dense<0xFF800000> : vector<8xf32>
    %276 = vector.multi_reduction <maximumf>, %275, %cst_176 [1] : vector<8x8xf32> to vector<8xf32>
    %277 = vector.shape_cast %276 : vector<8xf32> to vector<8x1xf32>
    %278 = vector.broadcast %277 : vector<8x1xf32> to vector<8x8xf32>
    %279 = arith.subf %275, %278 : vector<8x8xf32>
    %280 = math.exp %279 : vector<8x8xf32>
    %cst_177 = arith.constant dense<0.000000e+00> : vector<8xf32>
    %281 = vector.multi_reduction <add>, %280, %cst_177 [1] : vector<8x8xf32> to vector<8xf32>
    %282 = vector.shape_cast %281 : vector<8xf32> to vector<8x1xf32>
    %283 = tpu.reciprocal %282 {approx = true} : vector<8x1xf32> -> vector<8x1xf32>
    %284 = vector.broadcast %283 : vector<8x1xf32> to vector<8x8xf32>
    %285 = arith.mulf %280, %284 : vector<8x8xf32>
    %cst_178 = arith.constant dense<0.000000e+00> : vector<8x16xf32>
    %286 = tpu.matmul %285, %270, %cst_178 {dimension_numbers = #tpu.dot_dimension_numbers<[1], [0], [0], [1], [0, 0, 1, 1], [], []>} : vector<8x8xf32>, vector<8x16xf32>, vector<8x16xf32> -> vector<8x16xf32>
    %c8_179 = arith.constant 8 : index
    %c16_180 = arith.constant 16 : index
    %287 = vector.load %arg27[%c8_179, %c16_180] : memref<16x32xf32, #tpu.memory_space<vmem>>, vector<8x16xf32>
    tpu.vector_store %arg27[%c8_179, %c16_180], %286 {strides = array<i32>} : memref<16x32xf32, #tpu.memory_space<vmem>>, vector<8x16xf32>,
    %c0_181 = arith.constant 0 : index
    %c0_182 = arith.constant 0 : index
    %288 = vector.load %arg27[%c0_181, %c0_182] : memref<16x32xf32, #tpu.memory_space<vmem>>, vector<16x32xf32>
    %c1_183 = arith.constant 1 : index
    %c0_184 = arith.constant 0 : index
    %c0_185 = arith.constant 0 : index
    %289 = vector.load %arg7[%c1_183, %c0_184, %c0_185] : memref<2x32x32xf32, #tpu.memory_space<vmem>>, vector<1x32x32xf32>
    %290 = vector.shape_cast %289 : vector<1x32x32xf32> to vector<32x32xf32>
    %cst_186 = arith.constant dense<0.000000e+00> : vector<16x32xf32>
    %291 = tpu.matmul %288, %290, %cst_186 {dimension_numbers = #tpu.dot_dimension_numbers<[1], [0], [0], [1], [0, 0, 1, 1], [], []>} : vector<16x32xf32>, vector<32x32xf32>, vector<16x32xf32> -> vector<16x32xf32>
    %c1_187 = arith.constant 1 : index
    %c0_188 = arith.constant 0 : index
    %c0_189 = arith.constant 0 : index
    %292 = vector.load %arg8[%c1_187, %c0_188, %c0_189] : memref<2x1x32xf32, #tpu.memory_space<vmem>>, vector<1x1x32xf32>
    %293 = vector.shape_cast %292 : vector<1x1x32xf32> to vector<1x32xf32>
    %294 = vector.broadcast %293 : vector<1x32xf32> to vector<16x32xf32>
    %295 = arith.addf %291, %294 : vector<16x32xf32>
    %296 = arith.addf %295, %197 : vector<16x32xf32>
    %c1_190 = arith.constant 1 : index
    %c0_191 = arith.constant 0 : index
    %c0_192 = arith.constant 0 : index
    %297 = vector.load %arg9[%c1_190, %c0_191, %c0_192] : memref<2x1x32xf32, #tpu.memory_space<vmem>>, vector<1x1x32xf32>
    %298 = vector.shape_cast %297 : vector<1x1x32xf32> to vector<1x32xf32>
    %c1_193 = arith.constant 1 : index
    %c0_194 = arith.constant 0 : index
    %c0_195 = arith.constant 0 : index
    %299 = vector.load %arg10[%c1_193, %c0_194, %c0_195] : memref<2x1x32xf32, #tpu.memory_space<vmem>>, vector<1x1x32xf32>
    %300 = vector.shape_cast %299 : vector<1x1x32xf32> to vector<1x32xf32>
    %cst_196 = arith.constant dense<0.000000e+00> : vector<16xf32>
    %301 = vector.multi_reduction <add>, %296, %cst_196 [1] : vector<16x32xf32> to vector<16xf32>
    %302 = vector.shape_cast %301 : vector<16xf32> to vector<16x1xf32>
    %cst_197 = arith.constant 3.200000e+01 : f32
    %303 = vector.broadcast %cst_197 : f32 to vector<16x1xf32>
    %304 = arith.divf %302, %303 : vector<16x1xf32>
    %305 = vector.broadcast %304 : vector<16x1xf32> to vector<16x32xf32>
    %306 = arith.subf %296, %305 : vector<16x32xf32>
    %307 = arith.mulf %306, %306 : vector<16x32xf32>
    %cst_198 = arith.constant dense<0.000000e+00> : vector<16xf32>
    %308 = vector.multi_reduction <add>, %307, %cst_198 [1] : vector<16x32xf32> to vector<16xf32>
    %309 = vector.shape_cast %308 : vector<16xf32> to vector<16x1xf32>
    %cst_199 = arith.constant 3.200000e+01 : f32
    %310 = vector.broadcast %cst_199 : f32 to vector<16x1xf32>
    %311 = arith.divf %309, %310 : vector<16x1xf32>
    %cst_200 = arith.constant 9.99999996E-13 : f32
    %312 = vector.broadcast %cst_200 : f32 to vector<16x1xf32>
    %313 = arith.addf %311, %312 : vector<16x1xf32>
    %314 = math.rsqrt %313 : vector<16x1xf32>
    %315 = vector.broadcast %314 : vector<16x1xf32> to vector<16x32xf32>
    %316 = arith.mulf %306, %315 : vector<16x32xf32>
    %317 = vector.broadcast %298 : vector<1x32xf32> to vector<16x32xf32>
    %318 = arith.mulf %316, %317 : vector<16x32xf32>
    %319 = vector.broadcast %300 : vector<1x32xf32> to vector<16x32xf32>
    %320 = arith.addf %318, %319 : vector<16x32xf32>
    %c1_201 = arith.constant 1 : index
    %c0_202 = arith.constant 0 : index
    %c0_203 = arith.constant 0 : index
    %321 = vector.load %arg11[%c1_201, %c0_202, %c0_203] : memref<2x32x64xf32, #tpu.memory_space<vmem>>, vector<1x32x64xf32>
    %322 = vector.shape_cast %321 : vector<1x32x64xf32> to vector<32x64xf32>
    %cst_204 = arith.constant dense<0.000000e+00> : vector<16x64xf32>
    %323 = tpu.matmul %320, %322, %cst_204 {dimension_numbers = #tpu.dot_dimension_numbers<[1], [0], [0], [1], [0, 0, 1, 1], [], []>} : vector<16x32xf32>, vector<32x64xf32>, vector<16x64xf32> -> vector<16x64xf32>
    %c1_205 = arith.constant 1 : index
    %c0_206 = arith.constant 0 : index
    %c0_207 = arith.constant 0 : index
    %324 = vector.load %arg12[%c1_205, %c0_206, %c0_207] : memref<2x1x64xf32, #tpu.memory_space<vmem>>, vector<1x1x64xf32>
    %325 = vector.shape_cast %324 : vector<1x1x64xf32> to vector<1x64xf32>
    %326 = vector.broadcast %325 : vector<1x64xf32> to vector<16x64xf32>
    %327 = arith.addf %323, %326 : vector<16x64xf32>
    %cst_208 = arith.constant 5.000000e-01 : f32
    %328 = vector.broadcast %cst_208 : f32 to vector<16x64xf32>
    %329 = arith.mulf %328, %327 : vector<16x64xf32>
    %cst_209 = arith.constant 4.471500e-02 : f32
    %330 = vector.broadcast %cst_209 : f32 to vector<16x64xf32>
    %331 = arith.mulf %330, %327 : vector<16x64xf32>
    %332 = arith.mulf %331, %327 : vector<16x64xf32>
    %333 = arith.mulf %332, %327 : vector<16x64xf32>
    %334 = arith.addf %327, %333 : vector<16x64xf32>
    %cst_210 = arith.constant 0.797884583 : f32
    %335 = vector.broadcast %cst_210 : f32 to vector<16x64xf32>
    %336 = arith.mulf %335, %334 : vector<16x64xf32>
    %337 = math.tanh %336 : vector<16x64xf32>
    %cst_211 = arith.constant 1.000000e+00 : f32
    %338 = vector.broadcast %cst_211 : f32 to vector<16x64xf32>
    %339 = arith.addf %338, %337 : vector<16x64xf32>
    %340 = arith.mulf %329, %339 : vector<16x64xf32>
    %c1_212 = arith.constant 1 : index
    %c0_213 = arith.constant 0 : index
    %c0_214 = arith.constant 0 : index
    %341 = vector.load %arg13[%c1_212, %c0_213, %c0_214] : memref<2x64x32xf32, #tpu.memory_space<vmem>>, vector<1x64x32xf32>
    %342 = vector.shape_cast %341 : vector<1x64x32xf32> to vector<64x32xf32>
    %cst_215 = arith.constant dense<0.000000e+00> : vector<16x32xf32>
    %343 = tpu.matmul %340, %342, %cst_215 {dimension_numbers = #tpu.dot_dimension_numbers<[1], [0], [0], [1], [0, 0, 1, 1], [], []>} : vector<16x64xf32>, vector<64x32xf32>, vector<16x32xf32> -> vector<16x32xf32>
    %c1_216 = arith.constant 1 : index
    %c0_217 = arith.constant 0 : index
    %c0_218 = arith.constant 0 : index
    %344 = vector.load %arg14[%c1_216, %c0_217, %c0_218] : memref<2x1x32xf32, #tpu.memory_space<vmem>>, vector<1x1x32xf32>
    %345 = vector.shape_cast %344 : vector<1x1x32xf32> to vector<1x32xf32>
    %346 = vector.broadcast %345 : vector<1x32xf32> to vector<16x32xf32>
    %347 = arith.addf %343, %346 : vector<16x32xf32>
    %348 = arith.addf %347, %320 : vector<16x32xf32>
    %c1_219 = arith.constant 1 : index
    %c0_220 = arith.constant 0 : index
    %c0_221 = arith.constant 0 : index
    %349 = vector.load %arg15[%c1_219, %c0_220, %c0_221] : memref<2x1x32xf32, #tpu.memory_space<vmem>>, vector<1x1x32xf32>
    %350 = vector.shape_cast %349 : vector<1x1x32xf32> to vector<1x32xf32>
    %c1_222 = arith.constant 1 : index
    %c0_223 = arith.constant 0 : index
    %c0_224 = arith.constant 0 : index
    %351 = vector.load %arg16[%c1_222, %c0_223, %c0_224] : memref<2x1x32xf32, #tpu.memory_space<vmem>>, vector<1x1x32xf32>
    %352 = vector.shape_cast %351 : vector<1x1x32xf32> to vector<1x32xf32>
    %cst_225 = arith.constant dense<0.000000e+00> : vector<16xf32>
    %353 = vector.multi_reduction <add>, %348, %cst_225 [1] : vector<16x32xf32> to vector<16xf32>
    %354 = vector.shape_cast %353 : vector<16xf32> to vector<16x1xf32>
    %cst_226 = arith.constant 3.200000e+01 : f32
    %355 = vector.broadcast %cst_226 : f32 to vector<16x1xf32>
    %356 = arith.divf %354, %355 : vector<16x1xf32>
    %357 = vector.broadcast %356 : vector<16x1xf32> to vector<16x32xf32>
    %358 = arith.subf %348, %357 : vector<16x32xf32>
    %359 = arith.mulf %358, %358 : vector<16x32xf32>
    %cst_227 = arith.constant dense<0.000000e+00> : vector<16xf32>
    %360 = vector.multi_reduction <add>, %359, %cst_227 [1] : vector<16x32xf32> to vector<16xf32>
    %361 = vector.shape_cast %360 : vector<16xf32> to vector<16x1xf32>
    %cst_228 = arith.constant 3.200000e+01 : f32
    %362 = vector.broadcast %cst_228 : f32 to vector<16x1xf32>
    %363 = arith.divf %361, %362 : vector<16x1xf32>
    %cst_229 = arith.constant 9.99999996E-13 : f32
    %364 = vector.broadcast %cst_229 : f32 to vector<16x1xf32>
    %365 = arith.addf %363, %364 : vector<16x1xf32>
    %366 = math.rsqrt %365 : vector<16x1xf32>
    %367 = vector.broadcast %366 : vector<16x1xf32> to vector<16x32xf32>
    %368 = arith.mulf %358, %367 : vector<16x32xf32>
    %369 = vector.broadcast %350 : vector<1x32xf32> to vector<16x32xf32>
    %370 = arith.mulf %368, %369 : vector<16x32xf32>
    %371 = vector.broadcast %352 : vector<1x32xf32> to vector<16x32xf32>
    %372 = arith.addf %370, %371 : vector<16x32xf32>
    %c0_230 = arith.constant 0 : index
    %c0_231 = arith.constant 0 : index
    %373 = vector.load %arg2[%c0_230, %c0_231] : memref<4x16xf32, #tpu.memory_space<vmem>>, vector<4x16xf32>
    %cst_232 = arith.constant dense<0.000000e+00> : vector<4x32xf32>
    %374 = tpu.matmul %373, %372, %cst_232 {dimension_numbers = #tpu.dot_dimension_numbers<[1], [0], [0], [1], [0, 0, 1, 1], [], []>} : vector<4x16xf32>, vector<16x32xf32>, vector<4x32xf32> -> vector<4x32xf32>
    %c0_233 = arith.constant 0 : index
    %c0_234 = arith.constant 0 : index
    %375 = vector.load %arg17[%c0_233, %c0_234] : memref<32x32xf32, #tpu.memory_space<vmem>>, vector<32x32xf32>
    %cst_235 = arith.constant dense<0.000000e+00> : vector<4x32xf32>
    %376 = tpu.matmul %374, %375, %cst_235 {dimension_numbers = #tpu.dot_dimension_numbers<[1], [0], [0], [1], [0, 0, 1, 1], [], []>} : vector<4x32xf32>, vector<32x32xf32>, vector<4x32xf32> -> vector<4x32xf32>
    %c0_236 = arith.constant 0 : index
    %c0_237 = arith.constant 0 : index
    %377 = vector.load %arg18[%c0_236, %c0_237] : memref<1x32xf32, #tpu.memory_space<vmem>>, vector<1x32xf32>
    %378 = vector.broadcast %377 : vector<1x32xf32> to vector<4x32xf32>
    %379 = arith.addf %376, %378 : vector<4x32xf32>
    %cst_238 = arith.constant 5.000000e-01 : f32
    %380 = vector.broadcast %cst_238 : f32 to vector<4x32xf32>
    %381 = arith.mulf %380, %379 : vector<4x32xf32>
    %cst_239 = arith.constant 4.471500e-02 : f32
    %382 = vector.broadcast %cst_239 : f32 to vector<4x32xf32>
    %383 = arith.mulf %382, %379 : vector<4x32xf32>
    %384 = arith.mulf %383, %379 : vector<4x32xf32>
    %385 = arith.mulf %384, %379 : vector<4x32xf32>
    %386 = arith.addf %379, %385 : vector<4x32xf32>
    %cst_240 = arith.constant 0.797884583 : f32
    %387 = vector.broadcast %cst_240 : f32 to vector<4x32xf32>
    %388 = arith.mulf %387, %386 : vector<4x32xf32>
    %389 = math.tanh %388 : vector<4x32xf32>
    %cst_241 = arith.constant 1.000000e+00 : f32
    %390 = vector.broadcast %cst_241 : f32 to vector<4x32xf32>
    %391 = arith.addf %390, %389 : vector<4x32xf32>
    %392 = arith.mulf %381, %391 : vector<4x32xf32>
    %c0_242 = arith.constant 0 : index
    %c0_243 = arith.constant 0 : index
    %393 = vector.load %arg19[%c0_242, %c0_243] : memref<1x32xf32, #tpu.memory_space<vmem>>, vector<1x32xf32>
    %c0_244 = arith.constant 0 : index
    %c0_245 = arith.constant 0 : index
    %394 = vector.load %arg20[%c0_244, %c0_245] : memref<1x32xf32, #tpu.memory_space<vmem>>, vector<1x32xf32>
    %cst_246 = arith.constant dense<0.000000e+00> : vector<4xf32>
    %395 = vector.multi_reduction <add>, %392, %cst_246 [1] : vector<4x32xf32> to vector<4xf32>
    %396 = vector.shape_cast %395 : vector<4xf32> to vector<4x1xf32>
    %cst_247 = arith.constant 3.200000e+01 : f32
    %397 = vector.broadcast %cst_247 : f32 to vector<4x1xf32>
    %398 = arith.divf %396, %397 : vector<4x1xf32>
    %399 = vector.broadcast %398 : vector<4x1xf32> to vector<4x32xf32>
    %400 = arith.subf %392, %399 : vector<4x32xf32>
    %401 = arith.mulf %400, %400 : vector<4x32xf32>
    %cst_248 = arith.constant dense<0.000000e+00> : vector<4xf32>
    %402 = vector.multi_reduction <add>, %401, %cst_248 [1] : vector<4x32xf32> to vector<4xf32>
    %403 = vector.shape_cast %402 : vector<4xf32> to vector<4x1xf32>
    %cst_249 = arith.constant 3.200000e+01 : f32
    %404 = vector.broadcast %cst_249 : f32 to vector<4x1xf32>
    %405 = arith.divf %403, %404 : vector<4x1xf32>
    %cst_250 = arith.constant 9.99999996E-13 : f32
    %406 = vector.broadcast %cst_250 : f32 to vector<4x1xf32>
    %407 = arith.addf %405, %406 : vector<4x1xf32>
    %408 = math.rsqrt %407 : vector<4x1xf32>
    %409 = vector.broadcast %408 : vector<4x1xf32> to vector<4x32xf32>
    %410 = arith.mulf %400, %409 : vector<4x32xf32>
    %411 = vector.broadcast %393 : vector<1x32xf32> to vector<4x32xf32>
    %412 = arith.mulf %410, %411 : vector<4x32xf32>
    %413 = vector.broadcast %394 : vector<1x32xf32> to vector<4x32xf32>
    %414 = arith.addf %412, %413 : vector<4x32xf32>
    %c0_251 = arith.constant 0 : index
    %c0_252 = arith.constant 0 : index
    %415 = vector.load %arg21[%c0_251, %c0_252] : memref<32x8xf32, #tpu.memory_space<vmem>>, vector<32x8xf32>
    %cst_253 = arith.constant dense<0.000000e+00> : vector<4x8xf32>
    %416 = tpu.matmul %414, %415, %cst_253 {dimension_numbers = #tpu.dot_dimension_numbers<[1], [0], [0], [1], [0, 0, 1, 1], [], []>} : vector<4x32xf32>, vector<32x8xf32>, vector<4x8xf32> -> vector<4x8xf32>
    %c0_254 = arith.constant 0 : index
    %c0_255 = arith.constant 0 : index
    %417 = vector.load %arg22[%c0_254, %c0_255] : memref<1x8xf32, #tpu.memory_space<vmem>>, vector<1x8xf32>
    %418 = vector.broadcast %417 : vector<1x8xf32> to vector<4x8xf32>
    %419 = arith.addf %416, %418 : vector<4x8xf32>
    %c0_256 = arith.constant 0 : index
    %c0_257 = arith.constant 0 : index
    %420 = vector.load %arg24[%c0_256, %c0_257] : memref<4x8xf32, #tpu.memory_space<vmem>>, vector<4x8xf32>
    tpu.vector_store %arg24[%c0_256, %c0_257], %419 {strides = array<i32>} : memref<4x8xf32, #tpu.memory_space<vmem>>, vector<4x8xf32>,
    %c0_258 = arith.constant 0 : index
    %c0_259 = arith.constant 0 : index
    %421 = vector.load %arg23[%c0_258, %c0_259] : memref<4x1xi32, #tpu.memory_space<vmem>>, vector<4x1xi32>
    %422 = tpu.iota {dimensions = array<i32: 1>} : vector<4x8xi32>
    %423 = vector.broadcast %421 : vector<4x1xi32> to vector<4x8xi32>
    %424 = arith.cmpi eq, %422, %423 : vector<4x8xi32>
    %425 = arith.extui %424 : vector<4x8xi1> to vector<4x8xi32>
    %426 = arith.sitofp %425 : vector<4x8xi32> to vector<4x8xf32>
    %cst_260 = arith.constant dense<0xFF800000> : vector<4xf32>
    %427 = vector.multi_reduction <maximumf>, %419, %cst_260 [1] : vector<4x8xf32> to vector<4xf32>
    %428 = vector.shape_cast %427 : vector<4xf32> to vector<4x1xf32>
    %429 = vector.broadcast %428 : vector<4x1xf32> to vector<4x8xf32>
    %430 = arith.subf %419, %429 : vector<4x8xf32>
    %431 = math.exp %430 : vector<4x8xf32>
    %cst_261 = arith.constant dense<0.000000e+00> : vector<4xf32>
    %432 = vector.multi_reduction <add>, %431, %cst_261 [1] : vector<4x8xf32> to vector<4xf32>
    %433 = vector.shape_cast %432 : vector<4xf32> to vector<4x1xf32>
    %434 = math.log %433 : vector<4x1xf32>
    %435 = arith.addf %434, %428 : vector<4x1xf32>
    %436 = arith.mulf %419, %426 : vector<4x8xf32>
    %cst_262 = arith.constant dense<0.000000e+00> : vector<4xf32>
    %437 = vector.multi_reduction <add>, %436, %cst_262 [1] : vector<4x8xf32> to vector<4xf32>
    %438 = vector.shape_cast %437 : vector<4xf32> to vector<4x1xf32>
    %439 = arith.subf %435, %438 : vector<4x1xf32>
    %440 = vector.shape_cast %439 : vector<4x1xf32> to vector<1x4x1xf32>
    %cst_263 = arith.constant dense<0.000000e+00> : vector<1xf32>
    %441 = vector.multi_reduction <add>, %440, %cst_263 [1, 2] : vector<1x4x1xf32> to vector<1xf32>
    %442 = vector.shape_cast %441 : vector<1xf32> to vector<1x1x1xf32>
    %443 = vector.extract %442[0, 0, 0] : f32 from vector<1x1x1xf32>
    %cst_264 = arith.constant 2.500000e-01 : f32
    %444 = arith.mulf %443, %cst_264 : f32
    %c0_265 = arith.constant 0 : index
    %c0_266 = arith.constant 0 : index
    %445 = memref.load %arg25[%c0_265, %c0_266] : memref<1x1xf32, #tpu.memory_space<smem>>
    memref.store %444, %arg25[%c0_265, %c0_266] : memref<1x1xf32, #tpu.memory_space<smem>>
    return
  }
}

</mosaic_0001>

<bundles_post_ra>
// kernel: tpu_custom_call.1
= control target key start
LH: loop header
LB: loop body
LE: loop exit
PB: predicated region body
PF: predicated region fallthrough
CT: control target
= control target key end

     0   :  { %s4717_s0 = inlined_call_operand.hbm [shape: f32[16,32], index: 0, kind: input, shape index: {}]   ;;  %s4718_s1 = inlined_call_operand.hbm [shape: f32[2,8], index: 1, kind: input, shape index: {}]   ;;  %s4719_s2 = inlined_call_operand.hbm [shape: f32[4,16], index: 2, kind: input, shape index: {}]   ;;  %s4720_s3 = inlined_call_operand.vmem [shape: f32[1,32], index: 3, kind: input, shape index: {}]   ;;  %s4721_s4 = inlined_call_operand.hbm [shape: f32[1,32], index: 4, kind: input, shape index: {}]   ;;  %s4722_s5 = inlined_call_operand.vmem [shape: f32[2,32,96], index: 5, kind: input, shape index: {}]   ;;  %s4723_s6 = inlined_call_operand.hbm [shape: f32[2,1,96], index: 6, kind: input, shape index: {}]   ;;  %s4724_s7 = inlined_call_operand.vmem [shape: f32[2,32,32], index: 7, kind: input, shape index: {}]   ;;  %s4725_s8 = inlined_call_operand.hbm [shape: f32[2,1,32], index: 8, kind: input, shape index: {}]   ;;  %s4726_s9 = inlined_call_operand.hbm [shape: f32[2,1,32], index: 9, kind: input, shape index: {}]   ;;  %s4727_s10 = inlined_call_operand.hbm [shape: f32[2,1,32], index: 10, kind: input, shape index: {}]   ;;  %s4728_s11 = inlined_call_operand.vmem [shape: f32[2,32,64], index: 11, kind: input, shape index: {}]   ;;  %s4729_s12 = inlined_call_operand.hbm [shape: f32[2,1,64], index: 12, kind: input, shape index: {}]   ;;  %s4730_s13 = inlined_call_operand.vmem [shape: f32[2,64,32], index: 13, kind: input, shape index: {}]   ;;  %s4731_s14 = inlined_call_operand.hbm [shape: f32[2,1,32], index: 14, kind: input, shape index: {}]   ;;  %s4732_s15 = inlined_call_operand.hbm [shape: f32[2,1,32], index: 15, kind: input, shape index: {}]   ;;  %s4733_s16 = inlined_call_operand.hbm [shape: f32[2,1,32], index: 16, kind: input, shape index: {}]   ;;  %s4734_s17 = inlined_call_operand.vmem [shape: f32[32,32], index: 17, kind: input, shape index: {}]   ;;  %s4735_s18 = inlined_call_operand.vmem [shape: f32[1,32], index: 18, kind: input, shape index: {}]   ;;  %s4736_s19 = inlined_call_operand.vmem [shape: f32[1,32], index: 19, kind: input, shape index: {}]   ;;  %s4737_s20 = inlined_call_operand.vmem [shape: f32[1,32], index: 20, kind: input, shape index: {}]   ;;  %s4738_s21 = inlined_call_operand.vmem [shape: f32[32,8], index: 21, kind: input, shape index: {}]   ;;  %s4739_s22 = inlined_call_operand.vmem [shape: f32[1,8], index: 22, kind: input, shape index: {}]   ;;  %s4740_s23 = inlined_call_operand.vmem [shape: s32[4,1], index: 23, kind: input, shape index: {}]   ;;  %s4741_s24 = inlined_call_operand.hbm [shape: f32[4,8], index: 24, kind: output, shape index: {0}]   ;;  %s4742_s25 = inlined_call_operand.hbm [shape: f32[1,1], index: 25, kind: output, shape index: {1}]  }
   0x1   :  { %4757 = sst [smem:[#allocation36_spill]] %s4717_s0 }
   0x2   :  { %4758 = sst [smem:[#allocation37_spill]] %s4718_s1 }
   0x3   :  { %4759 = sst [smem:[#allocation38_spill]] %s4719_s2 }
   0x4   :  { %4760 = sst [smem:[#allocation39_spill]] %s4720_s3 }
   0x5   :  { %4761 = sst [smem:[#allocation40_spill]] %s4721_s4 }
   0x6   :  { %4762 = sst [smem:[#allocation41_spill]] %s4722_s5 }
   0x7   :  { %4763 = sst [smem:[#allocation42_spill]] %s4723_s6 }
   0x8   :  { %4764 = sst [smem:[#allocation43_spill]] %s4724_s7 }
   0x9   :  { %4765 = sst [smem:[#allocation44_spill]] %s4725_s8 }
   0xa   :  { %4766 = sst [smem:[#allocation45_spill]] %s4726_s9 }
   0xb   :  { %4767 = sst [smem:[#allocation46_spill]] %s4742_s25 }
   0xc   :  { %31 = vsyncpa [#allocation5], 0 }
   0xd   :  { %32 = vsyncpa [#allocation9], 0 }
   0xe   :  { %33 = vsyncpa [#allocation12], 0 }
   0xf   :  { %34 = vsyncpa [#allocation15], 0 }
  0x10   :  { %35 = vsyncpa [#allocation18], 0 }
  0x11   :  { %36 = vsyncpa [#allocation21], 0 }
  0x12   :  { %37 = vsyncpa [#allocation24], 0 }
  0x13   :  { %38 = vsyncpa [#allocation6], 0 }
  0x14   :  { %39 = vsyncpa [#allocation7], 0  ;;  %s3932_s29 = smov [#allocation8]   ;;  %s3933_s6 = smov [#allocation11]  }
  0x15   :  { %s58_s2 = sshll.u32 %s3932_s29, 4  ;;  %s80_s30 = sshll.u32 %s3933_s6, 4  ;;  %s59_s2 = int_to_ptr.vmem [resolvable:$true] %s58_s2  ;;  %s81_s30 = int_to_ptr.vmem [resolvable:$true] %s80_s30 }
  0x16   :  { %s4768_s26 = sld [smem:[#allocation37_spill]] }
  0x1c   :  { %s3618_s1 = scalar_lea.hbm %s4768_s26, 32 }
  0x1d   :  { %p3619_p0 = scmp.ne.s32.totalorder %s4768_s26, %s3618_s1  ;;  %p3622_p1 = scmp.lt.u32.totalorder %s3618_s1, %s4768_s26 }
  0x1f   :  { %p3624_p2 = pnand %p3622_p1, %p3619_p0 }
  0x21   :  { %3627 = shalt.err (!%p3624_p2)
}
  0x22   :  { %s3628_s9 = scalar_lea.vmem %s59_s2, 32  ;;  %p3633_p4 = scmp.lt.s32.totalorder %s59_s2, %s59_s2 }
  0x23   :  { %p3629_p3 = scmp.ne.s32.totalorder %s59_s2, %s3628_s9  ;;  %p3634_p5 = scmp.lt.s32.totalorder %s3628_s9, %s3628_s9 }
  0x25   :  { %p3635_p6 = por %p3634_p5, %p3633_p4 }
  0x27   :  { %p3636_p7 = pnand %p3635_p6, %p3629_p3 }
  0x29   :  { %3639 = shalt.err (!%p3636_p7)
}
  0x2a   :  { %61 = dma.hbm_to_vmem [thread:$0]  %s4768_s26, 32, %s59_s2, [#allocation9]  }
  0x2b   :  { %s4769_s7 = sld [smem:[#allocation40_spill]] }
  0x31   :  { %s3640_s3 = scalar_lea.hbm %s4769_s7, 16 }
  0x32   :  { %p3641_p8 = scmp.ne.s32.totalorder %s4769_s7, %s3640_s3  ;;  %p3644_p9 = scmp.lt.u32.totalorder %s3640_s3, %s4769_s7 }
  0x34   :  { %p3646_p10 = pnand %p3644_p9, %p3641_p8 }
  0x36   :  { %3649 = shalt.err (!%p3646_p10)
}
  0x37   :  { %s3650_s28 = scalar_lea.vmem %s81_s30, 16  ;;  %s3654_s9 = scalar_lea.vmem %s81_s30, 32 }
  0x38   :  { %p3651_p11 = scmp.ne.s32.totalorder %s81_s30, %s3650_s28  ;;  %p3655_p12 = scmp.lt.s32.totalorder %s81_s30, %s81_s30 }
  0x39   :  { %p3656_p13 = scmp.lt.s32.totalorder %s3654_s9, %s3650_s28 }
  0x3b   :  { %p3657_p0 = por %p3656_p13, %p3655_p12 }
  0x3d   :  { %p3658_p1 = pnand %p3657_p0, %p3651_p11 }
  0x3f   :  { %3661 = shalt.err (!%p3658_p1)
}
  0x40   :  { %83 = dma.hbm_to_vmem [thread:$0]  %s4769_s7, 16, %s81_s30, [#allocation12]  }
  0x41   :  { %s3934_s5 = smov [#allocation14]   ;;  %s3935_s29 = smov [#allocation17]  }
  0x42   :  { %s105_s0 = sshll.u32 %s3934_s5, 4  ;;  %s129_s6 = sshll.u32 %s3935_s29, 4  ;;  %s106_s0 = int_to_ptr.vmem [resolvable:$true] %s105_s0  ;;  %s4113_s6 = int_to_ptr.vmem [resolvable:$true] %s129_s6 }
  0x43   :  { %s4770_s27 = sld [smem:[#allocation44_spill]] }
  0x49   :  { %s3662_s1 = scalar_lea.hbm %s4770_s27, 32 }
  0x4a   :  { %p3663_p2 = scmp.ne.s32.totalorder %s4770_s27, %s3662_s1  ;;  %p3666_p3 = scmp.lt.u32.totalorder %s3662_s1, %s4770_s27 }
  0x4c   :  { %p3668_p4 = pnand %p3666_p3, %p3663_p2 }
  0x4e   :  { %3671 = shalt.err (!%p3668_p4)
}
  0x4f   :  { %s3672_s30 = scalar_lea.vmem %s106_s0, 32  ;;  %p3677_p6 = scmp.lt.s32.totalorder %s106_s0, %s106_s0 }
  0x50   :  { %p3673_p5 = scmp.ne.s32.totalorder %s106_s0, %s3672_s30  ;;  %p3678_p7 = scmp.lt.s32.totalorder %s3672_s30, %s3672_s30 }
  0x52   :  { %p3679_p8 = por %p3678_p7, %p3677_p6 }
  0x54   :  { %p3680_p9 = pnand %p3679_p8, %p3673_p5 }
  0x56   :  { %3683 = shalt.err (!%p3680_p9)
}
  0x57   :  { %s4753_s7 = smov 16   ;;  %s4755_s2 = smov 1  }
  0x58   :  { %111 = dma.hbm_to_vmem [thread:$0]  %s4770_s27, 32, %s106_s0, [#allocation15], %s4753_s7, %s4753_s7, %s4755_s2  }
  0x59   :  { %s3684_s3 = scalar_lea.hbm %s4727_s10, 32 }
  0x5a   :  { %p3685_p10 = scmp.ne.s32.totalorder %s4727_s10, %s3684_s3  ;;  %p3688_p11 = scmp.lt.u32.totalorder %s3684_s3, %s4727_s10 }
  0x5c   :  { %p3690_p12 = pnand %p3688_p11, %p3685_p10 }
  0x5e   :  { %3693 = shalt.err (!%p3690_p12)
}
  0x5f   :  { %s3694_s9 = scalar_lea.vmem %s4113_s6, 32  ;;  %p3699_p0 = scmp.lt.s32.totalorder %s4113_s6, %s4113_s6 }
  0x60   :  { %p3695_p13 = scmp.ne.s32.totalorder %s4113_s6, %s3694_s9  ;;  %p3700_p1 = scmp.lt.s32.totalorder %s3694_s9, %s3694_s9 }
  0x62   :  { %p3701_p2 = por %p3700_p1, %p3699_p0 }
  0x64   :  { %p3702_p3 = pnand %p3701_p2, %p3695_p13 }
  0x66   :  { %3705 = shalt.err (!%p3702_p3)
}
  0x67   :  { %135 = dma.hbm_to_vmem [thread:$0]  %s4727_s10, 32, %s4113_s6, [#allocation18], %s4753_s7, %s4753_s7, %s4755_s2  }
  0x68   :  { %s3938_s30 = smov [#allocation20]   ;;  %s3939_s5 = smov [#allocation4]  }
  0x69   :  { %s157_s26 = sshll.u32 %s3938_s30, 4  ;;  %s45_s25 = sshll.u32 %s3939_s5, 4  ;;  %s158_s26 = int_to_ptr.vmem [resolvable:$true] %s157_s26  ;;  %s4150_s25 = int_to_ptr.vmem [resolvable:$true] %s45_s25 }
  0x6a   :  { %s3706_s8 = scalar_lea.hbm %s4731_s14, 32 }
  0x6b   :  { %p3707_p4 = scmp.ne.s32.totalorder %s4731_s14, %s3706_s8  ;;  %p3710_p5 = scmp.lt.u32.totalorder %s3706_s8, %s4731_s14 }
  0x6d   :  { %p3712_p6 = pnand %p3710_p5, %p3707_p4 }
  0x6f   :  { %3715 = shalt.err (!%p3712_p6)
}
  0x70   :  { %s3716_s10 = scalar_lea.vmem %s158_s26, 32  ;;  %p3721_p8 = scmp.lt.s32.totalorder %s158_s26, %s158_s26 }
  0x71   :  { %p3717_p7 = scmp.ne.s32.totalorder %s158_s26, %s3716_s10  ;;  %p3722_p9 = scmp.lt.s32.totalorder %s3716_s10, %s3716_s10 }
  0x73   :  { %p3723_p10 = por %p3722_p9, %p3721_p8 }
  0x75   :  { %p3724_p11 = pnand %p3723_p10, %p3717_p7 }
  0x77   :  { %3727 = shalt.err (!%p3724_p11)
}
  0x78   :  { %163 = dma.hbm_to_vmem [thread:$0]  %s4731_s14, 32, %s158_s26, [#allocation21], %s4753_s7, %s4753_s7, %s4755_s2  }
  0x79   :  { %s4771_s5 = sld [smem:[#allocation36_spill]] }
  0x7f   :  { %s3728_s29 = scalar_lea.hbm %s4771_s5, 256 }
  0x80   :  { %p3729_p12 = scmp.ne.s32.totalorder %s4771_s5, %s3728_s29  ;;  %p3732_p13 = scmp.lt.u32.totalorder %s3728_s29, %s4771_s5 }
  0x82   :  { %p3734_p0 = pnand %p3732_p13, %p3729_p12 }
  0x84   :  { %3737 = shalt.err (!%p3734_p0)
}
  0x85   :  { %s3738_s28 = scalar_lea.vmem %s4150_s25, 256  ;;  %p3743_p2 = scmp.lt.s32.totalorder %s4150_s25, %s4150_s25 }
  0x86   :  { %p3739_p1 = scmp.ne.s32.totalorder %s4150_s25, %s3738_s28  ;;  %p3744_p3 = scmp.lt.s32.totalorder %s3738_s28, %s3738_s28 }
  0x88   :  { %p3745_p4 = por %p3744_p3, %p3743_p2 }
  0x8a   :  { %p3746_p5 = pnand %p3745_p4, %p3739_p1 }
  0x8c   :  { %3749 = shalt.err (!%p3746_p5)
}
  0x8d   :  { %s3940_s14 = smov 128   ;;  %s3941_s26 = smov 8  }
  0x8e   :  { %51 = dma.hbm_to_vmem [thread:$0]  %s4771_s5, 256, %s4150_s25, [#allocation5], %s3940_s14, %s3940_s14, %s3941_s26  }
  0x8f   :  { %s3942_s6 = smov [#allocation10]   ;;  %s3943_s27 = smov [#allocation13]  }
  0x90   :  { %s68_s0 = sshll.u32 %s3942_s6, 4  ;;  %s91_s30 = sshll.u32 %s3943_s27, 4  ;;  %s69_s0 = int_to_ptr.vmem [resolvable:$true] %s68_s0  ;;  %s4184_s30 = int_to_ptr.vmem [resolvable:$true] %s91_s30 }
  0x91   :  { %s4772_s8 = sld [smem:[#allocation38_spill]] }
  0x97   :  { %s3750_s1 = scalar_lea.hbm %s4772_s8, 64 }
  0x98   :  { %p3751_p6 = scmp.ne.s32.totalorder %s4772_s8, %s3750_s1  ;;  %p3754_p7 = scmp.lt.u32.totalorder %s3750_s1, %s4772_s8 }
  0x9a   :  { %p3756_p8 = pnand %p3754_p7, %p3751_p6 }
  0x9c   :  { %3759 = shalt.err (!%p3756_p8)
}
  0x9d   :  { %s3760_s25 = scalar_lea.vmem %s69_s0, 64  ;;  %p3765_p10 = scmp.lt.s32.totalorder %s69_s0, %s69_s0 }
  0x9e   :  { %p3761_p9 = scmp.ne.s32.totalorder %s69_s0, %s3760_s25  ;;  %p3766_p11 = scmp.lt.s32.totalorder %s3760_s25, %s3760_s25 }
  0xa0   :  { %p3767_p12 = por %p3766_p11, %p3765_p10 }
  0xa2   :  { %p3768_p13 = pnand %p3767_p12, %p3761_p9 }
  0xa4   :  { %3771 = shalt.err (!%p3768_p13)
}
  0xa5   :  { %71 = dma.hbm_to_vmem [thread:$0]  %s4772_s8, 64, %s69_s0, [#allocation9]  }
  0xa6   :  { %s4773_s10 = sld [smem:[#allocation42_spill]] }
  0xac   :  { %s3772_s6 = scalar_lea.hbm %s4773_s10, 32 }
  0xad   :  { %p3773_p0 = scmp.ne.s32.totalorder %s4773_s10, %s3772_s6  ;;  %p3776_p1 = scmp.lt.u32.totalorder %s3772_s6, %s4773_s10 }
  0xaf   :  { %p3778_p2 = pnand %p3776_p1, %p3773_p0 }
  0xb1   :  { %3781 = shalt.err (!%p3778_p2)
}
  0xb2   :  { %s3782_s3 = scalar_lea.vmem %s4184_s30, 32  ;;  %p3787_p4 = scmp.lt.s32.totalorder %s4184_s30, %s4184_s30 }
  0xb3   :  { %p3783_p3 = scmp.ne.s32.totalorder %s4184_s30, %s3782_s3  ;;  %p3788_p5 = scmp.lt.s32.totalorder %s3782_s3, %s3782_s3 }
  0xb5   :  { %p3789_p6 = por %p3788_p5, %p3787_p4 }
  0xb7   :  { %p3790_p7 = pnand %p3789_p6, %p3783_p3 }
  0xb9   :  { %3793 = shalt.err (!%p3790_p7)
}
  0xba   :  { %s4774_s0 = smov 1   ;;  %s4775_s8 = smov 16  }
  0xbb   :  { %97 = dma.hbm_to_vmem [thread:$0]  %s4773_s10, 32, %s4184_s30, [#allocation12], %s4775_s8, %s4775_s8, %s4774_s0  }
  0xbc   :  { %s3944_s28 = smov [#allocation16]   ;;  %s3945_s5 = smov [#allocation19]  }
  0xbd   :  { %s117_s25 = sshll.u32 %s3944_s28, 4  ;;  %s143_s14 = sshll.u32 %s3945_s5, 4  ;;  %s118_s25 = int_to_ptr.vmem [resolvable:$true] %s117_s25  ;;  %s4218_s14 = int_to_ptr.vmem [resolvable:$true] %s143_s14 }
  0xbe   :  { %s4776_s6 = sld [smem:[#allocation45_spill]] }
  0xc4   :  { %s3794_s27 = scalar_lea.hbm %s4776_s6, 32 }
  0xc5   :  { %p3795_p8 = scmp.ne.s32.totalorder %s4776_s6, %s3794_s27  ;;  %p3798_p9 = scmp.lt.u32.totalorder %s3794_s27, %s4776_s6 }
  0xc7   :  { %p3800_p10 = pnand %p3798_p9, %p3795_p8 }
  0xc9   :  { %3803 = shalt.err (!%p3800_p10)
}
  0xca   :  { %s3804_s30 = scalar_lea.vmem %s118_s25, 32  ;;  %p3809_p12 = scmp.lt.s32.totalorder %s118_s25, %s118_s25 }
  0xcb   :  { %p3805_p11 = scmp.ne.s32.totalorder %s118_s25, %s3804_s30  ;;  %p3810_p13 = scmp.lt.s32.totalorder %s3804_s30, %s3804_s30 }
  0xcd   :  { %p3811_p0 = por %p3810_p13, %p3809_p12 }
  0xcf   :  { %p3812_p1 = pnand %p3811_p0, %p3805_p11 }
  0xd1   :  { %3815 = shalt.err (!%p3812_p1)
}
  0xd2   :  { %123 = dma.hbm_to_vmem [thread:$0]  %s4776_s6, 32, %s118_s25, [#allocation15], %s4775_s8, %s4775_s8, %s4774_s0  }
  0xd3   :  { %s3816_s5 = scalar_lea.hbm %s4729_s12, 32 }
  0xd4   :  { %p3817_p2 = scmp.ne.s32.totalorder %s4729_s12, %s3816_s5  ;;  %p3820_p3 = scmp.lt.u32.totalorder %s3816_s5, %s4729_s12 }
  0xd6   :  { %p3822_p4 = pnand %p3820_p3, %p3817_p2 }
  0xd8   :  { %3825 = shalt.err (!%p3822_p4)
}
  0xd9   :  { %s3826_s2 = scalar_lea.vmem %s4218_s14, 32  ;;  %p3831_p6 = scmp.lt.s32.totalorder %s4218_s14, %s4218_s14 }
  0xda   :  { %p3827_p5 = scmp.ne.s32.totalorder %s4218_s14, %s3826_s2  ;;  %p3832_p7 = scmp.lt.s32.totalorder %s3826_s2, %s3826_s2 }
  0xdc   :  { %p3833_p8 = por %p3832_p7, %p3831_p6 }
  0xde   :  { %p3834_p9 = pnand %p3833_p8, %p3827_p5 }
  0xe0   :  { %3837 = shalt.err (!%p3834_p9)
}
  0xe1   :  { %149 = dma.hbm_to_vmem [thread:$0]  %s4729_s12, 32, %s4218_s14, [#allocation18], %s4775_s8, %s4775_s8, %s4774_s0  }
  0xe2   :  { %s3946_s29 = smov [#allocation22]   ;;  %s3947_s30 = smov [#allocation23]  }
  0xe3   :  { %s169_s3 = sshll.u32 %s3946_s29, 4  ;;  %s181_s10 = sshll.u32 %s3947_s30, 4  ;;  %s170_s3 = int_to_ptr.vmem [resolvable:$true] %s169_s3  ;;  %s4255_s10 = int_to_ptr.vmem [resolvable:$true] %s181_s10 }
  0xe4   :  { %s3838_s28 = scalar_lea.hbm %s4732_s15, 32 }
  0xe5   :  { %p3839_p10 = scmp.ne.s32.totalorder %s4732_s15, %s3838_s28  ;;  %p3842_p11 = scmp.lt.u32.totalorder %s3838_s28, %s4732_s15 }
  0xe7   :  { %p3844_p12 = pnand %p3842_p11, %p3839_p10 }
  0xe9   :  { %3847 = shalt.err (!%p3844_p12)
}
  0xea   :  { %s3848_s12 = scalar_lea.vmem %s170_s3, 32  ;;  %p3853_p0 = scmp.lt.s32.totalorder %s170_s3, %s170_s3 }
  0xeb   :  { %p3849_p13 = scmp.ne.s32.totalorder %s170_s3, %s3848_s12  ;;  %p3854_p1 = scmp.lt.s32.totalorder %s3848_s12, %s3848_s12 }
  0xed   :  { %p3855_p2 = por %p3854_p1, %p3853_p0 }
  0xef   :  { %p3856_p3 = pnand %p3855_p2, %p3849_p13 }
  0xf1   :  { %3859 = shalt.err (!%p3856_p3)
}
  0xf2   :  { %175 = dma.hbm_to_vmem [thread:$0]  %s4732_s15, 32, %s170_s3, [#allocation21], %s4775_s8, %s4775_s8, %s4774_s0  }
  0xf3   :  { %s3860_s6 = scalar_lea.hbm %s4733_s16, 32 }
  0xf4   :  { %p3861_p4 = scmp.ne.s32.totalorder %s4733_s16, %s3860_s6  ;;  %p3864_p5 = scmp.lt.u32.totalorder %s3860_s6, %s4733_s16 }
  0xf6   :  { %p3866_p6 = pnand %p3864_p5, %p3861_p4 }
  0xf8   :  { %3869 = shalt.err (!%p3866_p6)
}
  0xf9   :  { %s3870_s28 = scalar_lea.vmem %s4255_s10, 32  ;;  %p3875_p8 = scmp.lt.s32.totalorder %s4255_s10, %s4255_s10 }
  0xfa   :  { %p3871_p7 = scmp.ne.s32.totalorder %s4255_s10, %s3870_s28  ;;  %p3876_p9 = scmp.lt.s32.totalorder %s3870_s28, %s3870_s28 }
  0xfc   :  { %p3877_p10 = por %p3876_p9, %p3875_p8 }
  0xfe   :  { %p3878_p11 = pnand %p3877_p10, %p3871_p7 }
 0x100   :  { %3881 = shalt.err (!%p3878_p11)
}
 0x101   :  { %187 = dma.hbm_to_vmem [thread:$0]  %s4733_s16, 32, %s4255_s10, [#allocation24], %s4775_s8, %s4775_s8, %s4774_s0  }
 0x102   :  { %3914 = dma.done.wait [#allocation5], 256  }
 0x103   :  { %3915 = vsyncadd [#allocation5], 4294967040 }
 0x104   :  { %3916 = dma.done.wait [#allocation9], 96  }
 0x105   :  { %3917 = vsyncadd [#allocation9], 4294967200 }
 0x106   :  { %3918 = dma.done.wait [#allocation12], 48  }
 0x107   :  { %3919 = vsyncadd [#allocation12], 4294967248 }
 0x108   :  { %3920 = dma.done.wait [#allocation15], 64  }
 0x109   :  { %3921 = vsyncadd [#allocation15], 4294967232 }
 0x10a   :  { %3922 = dma.done.wait [#allocation18], 64  }
 0x10b   :  { %3923 = vsyncadd [#allocation18], 4294967232 }
 0x10c   :  { %3924 = dma.done.wait [#allocation21], 64  }
 0x10d   :  { %3925 = vsyncadd [#allocation21], 4294967232 }
 0x10e   :  { %3926 = dma.done.wait [#allocation24], 32  }
 0x10f   :  { %3927 = vsyncadd [#allocation24], 4294967264  ;;  %vm242_vm0 = vcmask 261120   ;;  %v238_v0 = vld [vmem:[#allocation4] sm:$0xff]  ;;  %v239_v1 = vld [vmem:[#allocation4 + $0x8] sm:$0xff]  ;;  %s4777_s10 = sld [smem:[#allocation41_spill]] }
 0x110   :  { %v243_v2 = vsel %vm242_vm0, %v238_v0, 0.0  ;;  %v246_v3 = vsel %vm242_vm0, %v239_v1, 0.0  ;;  %s4778_s25 = sld [smem:[#allocation39_spill]]  ;;  %v3021_v29 = vld [vmem:[#allocation11] ss:$0 sm:$0xff]  ;;  %v3948_v36 = vmov 0.0  }
 0x111   :  { %244 = vadd.xlane.f32.xlu0 %v243_v2  ;;  %3222 = vmatprep.subr.mxu1 %v3948_v36  ;;  %v3022_v37 = vld [vmem:[#allocation13] ss:$0 sm:$0xff]  ;;  %vm378_vm1 = vcmask 785408   ;;  %vm3949_vm2 = vmmov 0   ;;  %s3950_s6 = smov 80   ;;  %s3951_s29 = smov 96  }
 0x112   :  { %3224 = vmatprep.mubr.msk.f32.mxu1 %vm3949_vm2, %v3948_v36  ;;  %s3952_s30 = smov 112   ;;  %vm386_vm3 = vcmask 130048   ;;  %v4362_v51 = vld [vmem:[#allocation8] ss:$0 sm:$0xff]  ;;  %vm467_vm4 = vcmask 64512   ;;  %s3953_s1 = smov 48  }
 0x113   :  { %v4368_v62 = vld [vmem:[#allocation8 + $0x1] ss:$0 sm:$0xff]  ;;  %s3954_s4 = smov 64   ;;  %s4779_s3 = sld [smem:[#allocation43_spill]]  ;;  %vm729_vm5 = vcmask 261248   ;;  %vm1343_vm6 = vcmask 523264  }
 0x114   :  { %vm2832_vm7 = vcmask 257024   ;;  %vm2944_vm8 = vcmask 60416   ;;  %vm2972_vm10 = vcmask 3072  }
 0x115   :  { %247 = vadd.xlane.f32.xlu0 %v246_v3  ;;  %v286_v14 = vld [vmem:[%s4777_s10] sm:$0xff]  ;;  %v287_v15 = vld [vmem:[%s4777_s10 + $0x8] sm:$0xff]  ;;  %v288_v16 = vld [vmem:[%s4777_s10 + $0x10] sm:$0xff] }
 0x116   :  { %v3424_v17 = vpack.c.bf16 %v287_v15, %v286_v14  ;;  %v289_v18 = vld [vmem:[%s4777_s10 + $0x18] sm:$0xff]  ;;  %v3020_v27 = vld [vmem:[%s4778_s25] ss:$0 sm:$0xff] }
 0x117   :  { %v3428_v19 = vpack.c.bf16 %v289_v18, %v288_v16 }
 0x118   :  { %3425 = vmatprep.subr.bf16.mxu0 %v3424_v17 }
 0x119   :  { %3427 = vmatpush3.bf16.msra.mxu0 %v3424_v17 }
 0x11a   :  { %3429 = vmatprep.subr.bf16.mxu0 %v3428_v19 }
 0x11d   :  { %3431 = vmatpush3.bf16.msra.mxu0 %v3428_v19 }
 0x11e   :  { %3232 = vmatprep.subr.mxu0 %v3948_v36 }
 0x19e   :  { %v245_v4 = vpop.xlane.xlu0 %244 }
 0x19f   :  { %v250_v5 = vmul.f32 0.03125, %v245_v4 }
 0x1a1   :  { %v252_v6 = vsub.f32 %v238_v0, %v250_v5 }
 0x1a2   :  { %v248_v7 = vpop.xlane.xlu0 %247 }
 0x1a3   :  { %v251_v8 = vmul.f32 0.03125, %v248_v7  ;;  %v254_v9 = vmul.f32 %v252_v6, %v252_v6 }
 0x1a5   :  { %v253_v10 = vsub.f32 %v239_v1, %v251_v8  ;;  %v256_v11 = vsel %vm242_vm0, %v254_v9, 0.0 }
 0x1a6   :  { %257 = vadd.xlane.f32.xlu1 %v256_v11 }
 0x1a7   :  { %v255_v12 = vmul.f32 %v253_v10, %v253_v10 }
 0x1a9   :  { %v259_v13 = vsel %vm242_vm0, %v255_v12, 0.0 }
 0x1aa   :  { %260 = vadd.xlane.f32.xlu1 %v259_v13 }
 0x233   :  { %v258_v20 = vpop.xlane.xlu1 %257 }
 0x234   :  { %v262_v21 = vmul.f32 0.03125, %v258_v20 }
 0x236   :  { %v264_v22 = vadd.f32 1e-12, %v262_v21 }
 0x237   :  { %v261_v23 = vpop.xlane.xlu1 %260 }
 0x238   :  { %3550 = vrsqrt.f32 %v264_v22  ;;  %v263_v24 = vmul.f32 0.03125, %v261_v23 }
 0x23a   :  { %v265_v25 = vadd.f32 1e-12, %v263_v24 }
 0x23c   :  { %3552 = vrsqrt.f32 %v265_v25 }
 0x242   :  { %v3551_v26 = vpop.eup %3550 }
 0x243   :  { %v268_v28 = vmul.f32 %v3551_v26, %v252_v6 }
 0x245   :  { %v276_v30 = vmul.f32 %v3020_v27, %v268_v28 }
 0x246   :  { %v3553_v31 = vpop.eup %3552 }
 0x247   :  { %v269_v32 = vmul.f32 %v3553_v31, %v253_v10  ;;  %v4311_v33 = vadd.f32 %v3021_v29, %v276_v30 }
 0x249   :  { %v277_v34 = vmul.f32 %v3020_v27, %v269_v32  ;;  %3219 = vmatprep.mubr.msk.f32.mxu0 %vm242_vm0, %v4311_v33 }
 0x24b   :  { %v4315_v35 = vadd.f32 %v3021_v29, %v277_v34 }
 0x24d   :  { %3220 = vmatmul.mubr.msk.f32.vlgmr.msra.gmra.mrb[0].mxu0 %vm242_vm0, %v4315_v35 }
 0x24e   :  { %3234 = vmatprep.mubr.msk.f32.mxu0 %vm3949_vm2, %v3948_v36 }
 0x320   :  { %v3221_v38 = vpop.f32.mrb[0].mxu0 }
 0x321   :  { %v375_v39 = vadd.f32 %v3221_v38, %v3022_v37  ;;  %v369_v40 = vpop.f32.mrb[1].mxu0 }
 0x322   :  { %v370_v41 = vadd.f32 %v3022_v37, %v369_v40 }
 0x323   :  { %380 = vst.msk [vmem:[#allocation2 + $0x8] sm:$0xff] %vm378_vm1, %v375_v39 }
 0x324   :  { %379 = vst.msk [vmem:[#allocation2] sm:$0xff] %vm378_vm1, %v370_v41 }
 0x32a   :  { %v4333_v43 = vld [vmem:[#allocation2 + $0x8] sm:$0xff] }
 0x32b   :  { %v4327_v42 = vld [vmem:[#allocation2] sm:$0xff] }
 0x32c   :  { %560 = vrot.lane.b32.xlu1 %v4327_v42, %s3950_s6  ;;  %384 = vrot.lane.b32.xlu0 %v4327_v42, %s3951_s29 }
 0x330   :  { %558 = vrot.lane.b32.xlu1 %v4327_v42, %s3952_s30  ;;  %908 = vrot.lane.b32.xlu0 %v4333_v43, %s3950_s6 }
 0x334   :  { %734 = vrot.lane.b32.xlu1 %v4333_v43, %s3951_s29 }
 0x338   :  { %906 = vrot.lane.b32.xlu1 %v4333_v43, %s3952_s30 }
 0x39e   :  { %v561_v44 = vpop.permute.xlu1 %560  ;;  %v385_v45 = vpop.permute.xlu0 %384 }
 0x39f   :  { %3223 = vmatpush3.xpose.msk.msra.mxu1 %vm386_vm3, %v385_v45  ;;  %3233 = vmatpush3.xpose.msk.msra.mxu0 %vm386_vm3, %v561_v44 }
 0x3a0   :  { %3242 = vmatprep.subr.mxu0 %v3948_v36  ;;  %3227 = vmatprep.subr.mxu1 %v3948_v36 }
 0x3a2   :  { %v559_v46 = vpop.permute.xlu1 %558  ;;  %3225 = vmatmul.mubr.msk.f32.vlgmr.msra.gmra.mrb[0].mxu1 %vm386_vm3, %v4327_v42  ;;  %v909_v48 = vpop.permute.xlu0 %908 }
 0x3a3   :  { %3235 = vmatmul.mubr.msk.f32.vlgmr.msra.gmra.mrb[2].mxu0 %vm386_vm3, %v559_v46  ;;  %3229 = vmatprep.mubr.msk.f32.mxu1 %vm3949_vm2, %v3948_v36 }
 0x3a4   :  { %3244 = vmatprep.mubr.msk.f32.mxu0 %vm3949_vm2, %v3948_v36 }
 0x3a6   :  { %v735_v47 = vpop.permute.xlu1 %734 }
 0x3a7   :  { %3243 = vmatpush3.xpose.msk.msra.mxu0 %vm386_vm3, %v735_v47 }
 0x3a8   :  { %3252 = vmatprep.subr.mxu0 %v3948_v36 }
 0x3aa   :  { %3245 = vmatmul.mubr.msk.f32.vlgmr.msra.gmra.mrb[4].mxu0 %vm386_vm3, %v4333_v43  ;;  %v907_v49 = vpop.permute.xlu1 %906 }
 0x3ab   :  { %3253 = vmatpush3.xpose.msk.msra.mxu0 %vm386_vm3, %v909_v48  ;;  %3254 = vmatprep.mubr.msk.f32.mxu0 %vm3949_vm2, %v3948_v36 }
 0x3ae   :  { %3255 = vmatmul.mubr.msk.f32.vlgmr.msra.gmra.mrb[6].mxu0 %vm386_vm3, %v907_v49 }
 0x475   :  { %v457_v50 = vpop.f32.mrb[0].mxu1 }
 0x476   :  { %v461_v52 = vmul.f32 0.25, %v457_v50  ;;  %v3226_v53 = vpop.f32.mrb[1].mxu1  ;;  %v632_v54 = vpop.f32.mrb[2].mxu0 }
 0x477   :  { %v636_v55 = vmul.f32 0.25, %v632_v54  ;;  %v3236_v56 = vpop.f32.mrb[3].mxu0  ;;  %v1080_v54 = vld [vmem:[%s4779_s3] sm:$0xff] }
 0x478   :  { %v466_v57 = vadd.f32 %v4362_v51, %v461_v52 }
 0x479   :  { %v637_v58 = vadd.f32 %v4362_v51, %v636_v55  ;;  %v1081_v55 = vld [vmem:[%s4779_s3 + $0x8] sm:$0xff] }
 0x47a   :  { %v468_v59 = vsel %vm467_vm4, %v466_v57, -inf  ;;  %v3432_v56 = vpack.c.bf16 %v1081_v55, %v1080_v54  ;;  %v1334_v55 = vld [vmem:[%s4730_s13 + $0x30] sm:$0xff] }
 0x47b   :  { %469 = vmax.xlane.f32.xlu0 %v468_v59  ;;  %v638_v60 = vsel %vm467_vm4, %v637_v58, -inf }
 0x47c   :  { %639 = vmax.xlane.f32.xlu1 %v638_v60  ;;  %3433 = vmatprep.subr.bf16.mxu0 %v3432_v56 }
 0x47d   :  { %v806_v61 = vpop.f32.mrb[4].mxu0  ;;  %3435 = vmatpush3.bf16.msra.mxu0 %v3432_v56  ;;  %v1335_v56 = vld [vmem:[%s4730_s13 + $0x38] sm:$0xff] }
 0x47e   :  { %v810_v63 = vmul.f32 0.25, %v806_v61  ;;  %v3246_v0 = vpop.f32.mrb[5].mxu0 }
 0x480   :  { %v815_v1 = vadd.f32 %v4368_v62, %v810_v63 }
 0x481   :  { %v980_v2 = vpop.f32.mrb[6].mxu0 }
 0x482   :  { %v984_v3 = vmul.f32 0.25, %v980_v2  ;;  %v3256_v4 = vpop.f32.mrb[7].mxu0  ;;  %v816_v5 = vsel %vm467_vm4, %v815_v1, -inf }
 0x483   :  { %817 = vmax.xlane.f32.xlu0 %v816_v5 }
 0x484   :  { %v985_v6 = vadd.f32 %v4368_v62, %v984_v3  ;;  %v3039_v3 = vld [vmem:[#allocation14] ss:$0 sm:$0xff] }
 0x486   :  { %v986_v7 = vsel %vm467_vm4, %v985_v6, -inf }
 0x487   :  { %987 = vmax.xlane.f32.xlu0 %v986_v7 }
 0x508   :  { %v470_v8 = vpop.xlane.xlu0 %469 }
 0x509   :  { %v471_v9 = vsub.f32 %v466_v57, %v470_v8  ;;  %v640_v10 = vpop.xlane.xlu1 %639  ;;  %v1082_v57 = vld [vmem:[%s4779_s3 + $0x10] sm:$0xff] }
 0x50a   :  { %v641_v11 = vsub.f32 %v637_v58, %v640_v10  ;;  %v1083_v58 = vld [vmem:[%s4779_s3 + $0x18] sm:$0xff] }
 0x50b   :  { %v472_v12 = vmul.f32 1.442695, %v471_v9  ;;  %v3436_v59 = vpack.c.bf16 %v1083_v58, %v1082_v57  ;;  %v3460_v57 = vpack.c.bf16 %v1335_v56, %v1334_v55  ;;  %v3044_v58 = vld [vmem:[#allocation19] ss:$0 sm:$0xff]  ;;  %v3051_v56 = vld [vmem:[#allocation23] ss:$0 sm:$0xff] }
 0x50c   :  { %v642_v13 = vmul.f32 1.442695, %v641_v11 }
 0x50d   :  { %3554 = vpow2.f32 %v472_v12  ;;  %3437 = vmatprep.subr.bf16.mxu0 %v3436_v59 }
 0x50e   :  { %3556 = vpow2.f32 %v642_v13  ;;  %3439 = vmatpush3.bf16.msra.mxu0 %v3436_v59 }
 0x510   :  { %v818_v14 = vpop.xlane.xlu0 %817 }
 0x511   :  { %v819_v15 = vsub.f32 %v815_v1, %v818_v14 }
 0x513   :  { %v820_v16 = vmul.f32 1.442695, %v819_v15 }
 0x514   :  { %v988_v23 = vpop.xlane.xlu0 %987 }
 0x515   :  { %3558 = vpow2.f32 %v820_v16  ;;  %v989_v24 = vsub.f32 %v985_v6, %v988_v23  ;;  %v1220_v23 = vld [vmem:[%s4728_s11 + $0x10] sm:$0xff] }
 0x517   :  { %v3555_v17 = vpop.eup %3554  ;;  %v990_v25 = vmul.f32 1.442695, %v989_v24  ;;  %v1221_v24 = vld [vmem:[%s4728_s11 + $0x18] sm:$0xff] }
 0x518   :  { %v3557_v18 = vpop.eup %3556  ;;  %v474_v19 = vsel %vm467_vm4, %v3555_v17, 0.0 }
 0x519   :  { %475 = vadd.xlane.f32.xlu0 %v474_v19  ;;  %v644_v20 = vsel %vm467_vm4, %v3557_v18, 0.0  ;;  %3560 = vpow2.f32 %v990_v25  ;;  %v3444_v25 = vpack.c.bf16 %v1221_v24, %v1220_v23 }
 0x51a   :  { %645 = vadd.xlane.f32.xlu1 %v644_v20 }
 0x51f   :  { %v3559_v21 = vpop.eup %3558 }
 0x520   :  { %v822_v22 = vsel %vm467_vm4, %v3559_v21, 0.0 }
 0x521   :  { %823 = vadd.xlane.f32.xlu0 %v822_v22 }
 0x523   :  { %v3561_v26 = vpop.eup %3560 }
 0x524   :  { %v992_v27 = vsel %vm467_vm4, %v3561_v26, 0.0 }
 0x52b   :  { %649 = vrot.lane.b32.xlu1 %v4327_v42, %s3953_s1 }
 0x52f   :  { %827 = vrot.lane.b32.xlu1 %v4333_v43, %s3954_s4 }
 0x537   :  { %479 = vrot.lane.b32.xlu0 %v4327_v42, %s3954_s4 }
 0x553   :  { %993 = vadd.xlane.f32.xlu1 %v992_v27 }
 0x564   :  { %997 = vrot.lane.b32.xlu1 %v4333_v43, %s3953_s1 }
 0x5a6   :  { %v476_v28 = vpop.xlane.xlu0 %475 }
 0x5a7   :  { %3562 = vrcp.f32 %v476_v28  ;;  %v646_v29 = vpop.xlane.xlu1 %645 }
 0x5a8   :  { %3564 = vrcp.f32 %v646_v29 }
 0x5ab   :  { %v650_v34 = vpop.permute.xlu1 %649 }
 0x5ae   :  { %v824_v30 = vpop.xlane.xlu0 %823 }
 0x5af   :  { %3566 = vrcp.f32 %v824_v30  ;;  %v828_v40 = vpop.permute.xlu1 %827 }
 0x5b1   :  { %v3563_v31 = vpop.eup %3562 }
 0x5b2   :  { %v478_v32 = vmul.f32 %v3563_v31, %v3555_v17  ;;  %v480_v37 = vpop.permute.xlu0 %479  ;;  %v3565_v38 = vpop.eup %3564 }
 0x5b3   :  { %3228 = vmatpush3.msra.mxu1 %v480_v37  ;;  %v648_v39 = vmul.f32 %v3565_v38, %v3557_v18  ;;  %v3043_v38 = vld [vmem:[#allocation17] ss:$0 sm:$0xff] }
 0x5b4   :  { %3230 = vmatmul.mubr.msk.f32.vlgmr.msra.gmra.mrb[2].mxu1 %vm467_vm4, %v478_v32  ;;  %3237 = vmatprep.subr.mxu1 %v3948_v36 }
 0x5b5   :  { %3238 = vmatpush3.msra.mxu1 %v650_v34  ;;  %3239 = vmatprep.mubr.msk.f32.mxu1 %vm3949_vm2, %v3948_v36  ;;  %v3042_v34 = vld [vmem:[#allocation16] ss:$0 sm:$0xff] }
 0x5b6   :  { %3247 = vmatprep.subr.mxu1 %v3948_v36 }
 0x5b8   :  { %3240 = vmatmul.mubr.msk.f32.vlgmr.msra.gmra.mrb[4].mxu1 %vm467_vm4, %v648_v39 }
 0x5b9   :  { %v3567_v41 = vpop.eup %3566  ;;  %3248 = vmatpush3.msra.mxu1 %v828_v40  ;;  %3249 = vmatprep.mubr.msk.f32.mxu1 %vm3949_vm2, %v3948_v36 }
 0x5ba   :  { %v826_v42 = vmul.f32 %v3567_v41, %v3559_v21  ;;  %3257 = vmatprep.subr.mxu1 %v3948_v36  ;;  %v1219_v21 = vld [vmem:[%s4728_s11 + $0x8] sm:$0xff] }
 0x5bc   :  { %3250 = vmatmul.mubr.msk.f32.vlgmr.msra.gmra.mrb[6].mxu1 %vm467_vm4, %v826_v42 }
 0x5bd   :  { %3259 = vmatprep.mubr.msk.f32.mxu1 %vm3949_vm2, %v3948_v36 }
 0x5e0   :  { %v994_v43 = vpop.xlane.xlu1 %993 }
 0x5e1   :  { %3568 = vrcp.f32 %v994_v43 }
 0x5e4   :  { %v998_v44 = vpop.permute.xlu1 %997 }
 0x5e5   :  { %3258 = vmatpush3.msra.mxu1 %v998_v44 }
 0x5eb   :  { %v3569_v45 = vpop.eup %3568 }
 0x5ec   :  { %v996_v46 = vmul.f32 %v3569_v45, %v3561_v26  ;;  %v1328_v45 = vld [vmem:[%s4730_s13] sm:$0xff] }
 0x5ee   :  { %3260 = vmatmul.mubr.msk.f32.vlgmr.msra.gmra.mrb[8].mxu1 %vm467_vm4, %v996_v46  ;;  %v1329_v46 = vld [vmem:[%s4730_s13 + $0x8] sm:$0xff] }
 0x687   :  { %v551_v47 = vpop.f32.mrb[2].mxu1 }
 0x688   :  { %555 = vst.msk [vmem:[#allocation3] sm:$0xff] %vm386_vm3, %v551_v47  ;;  %v3231_v48 = vpop.f32.mrb[3].mxu1  ;;  %v3448_v47 = vpack.c.bf16 %v1329_v46, %v1328_v45 }
 0x689   :  { %v1330_v48 = vld [vmem:[%s4730_s13 + $0x10] sm:$0xff] }
 0x68a   :  { %3449 = vmatprep.subr.bf16.mxu0 %v3448_v47 }
 0x68b   :  { %v721_v49 = vpop.f32.mrb[4].mxu1 }
 0x68c   :  { %726 = vrot.lane.b32.xlu0 %v721_v49, %s4775_s8  ;;  %v3241_v50 = vpop.f32.mrb[5].mxu1  ;;  %v1331_v49 = vld [vmem:[%s4730_s13 + $0x18] sm:$0xff] }
 0x68d   :  { %v3452_v50 = vpack.c.bf16 %v1331_v49, %v1330_v48 }
 0x68f   :  { %v899_v52 = vpop.f32.mrb[6].mxu1 }
 0x690   :  { %903 = vst.msk [vmem:[#allocation3 + $0x8] sm:$0xff] %vm386_vm3, %v899_v52  ;;  %v3251_v53 = vpop.f32.mrb[7].mxu1  ;;  %v1332_v52 = vld [vmem:[%s4730_s13 + $0x20] sm:$0xff] }
 0x691   :  { %v1333_v53 = vld [vmem:[%s4730_s13 + $0x28] sm:$0xff] }
 0x692   :  { %v3456_v54 = vpack.c.bf16 %v1333_v53, %v1332_v52  ;;  %v3050_v52 = vld [vmem:[#allocation22] ss:$0 sm:$0xff] }
 0x6c1   :  { %v1069_v60 = vpop.f32.mrb[8].mxu1 }
 0x6c2   :  { %1074 = vrot.lane.b32.xlu1 %v1069_v60, %s4775_s8  ;;  %v3261_v61 = vpop.f32.mrb[9].mxu1 }
 0x6fe   :  { %v727_v63 = vpop.permute.xlu0 %726 }
 0x6ff   :  { %730 = vst.msk [vmem:[#allocation3] sm:$0xff] %vm729_vm5, %v727_v63 }
 0x706   :  { %v1078_v0 = vld [vmem:[#allocation3] sm:$0xff] }
 0x707   :  { %3270 = vmatprep.mubr.msk.f32.mxu0 %vm242_vm0, %v1078_v0 }
 0x734   :  { %v1075_v1 = vpop.permute.xlu1 %1074 }
 0x735   :  { %1077 = vst.msk [vmem:[#allocation3 + $0x8] sm:$0xff] %vm729_vm5, %v1075_v1 }
 0x73c   :  { %v1079_v2 = vld [vmem:[#allocation3 + $0x8] sm:$0xff] }
 0x73d   :  { %3271 = vmatmul.mubr.msk.f32.vlgmr.msra.gmra.mrb[8].mxu0 %vm242_vm0, %v1079_v2 }
 0x73e   :  { %3451 = vmatpush3.bf16.msra.mxu0 %v3448_v47 }
 0x73f   :  { %3453 = vmatprep.subr.bf16.mxu0 %v3452_v50 }
 0x742   :  { %3455 = vmatpush3.bf16.msra.mxu0 %v3452_v50 }
 0x743   :  { %3457 = vmatprep.subr.bf16.mxu0 %v3456_v54 }
 0x746   :  { %3459 = vmatpush3.bf16.msra.mxu0 %v3456_v54 }
 0x747   :  { %3461 = vmatprep.subr.bf16.mxu0 %v3460_v57 }
 0x74a   :  { %3463 = vmatpush3.bf16.msra.mxu0 %v3460_v57 }
 0x74b   :  { %3324 = vmatprep.subr.mxu0 %v3948_v36 }
 0x810   :  { %v3272_v4 = vpop.f32.mrb[8].mxu0 }
 0x811   :  { %v1169_v5 = vadd.f32 %v3272_v4, %v3039_v3  ;;  %v1163_v6 = vpop.f32.mrb[9].mxu0 }
 0x812   :  { %v1164_v7 = vadd.f32 %v3039_v3, %v1163_v6 }
 0x813   :  { %v1173_v8 = vadd.f32 %v1169_v5, %v4315_v35 }
 0x814   :  { %v1172_v9 = vadd.f32 %v1164_v7, %v4311_v33  ;;  %v1218_v33 = vld [vmem:[%s4728_s11] sm:$0xff] }
 0x815   :  { %v1179_v10 = vsel %vm242_vm0, %v1173_v8, 0.0  ;;  %v3440_v22 = vpack.c.bf16 %v1219_v21, %v1218_v33 }
 0x816   :  { %1180 = vadd.xlane.f32.xlu1 %v1179_v10  ;;  %v1176_v11 = vsel %vm242_vm0, %v1172_v9, 0.0 }
 0x817   :  { %1177 = vadd.xlane.f32.xlu0 %v1176_v11  ;;  %3441 = vmatprep.subr.bf16.mxu1 %v3440_v22 }
 0x818   :  { %3443 = vmatpush3.bf16.msra.mxu1 %v3440_v22 }
 0x819   :  { %3445 = vmatprep.subr.bf16.mxu1 %v3444_v25 }
 0x81c   :  { %3447 = vmatpush3.bf16.msra.mxu1 %v3444_v25 }
 0x8a3   :  { %v1181_v12 = vpop.xlane.xlu1 %1180 }
 0x8a4   :  { %v1183_v13 = vmul.f32 0.03125, %v1181_v12  ;;  %v1178_v14 = vpop.xlane.xlu0 %1177 }
 0x8a5   :  { %v1182_v15 = vmul.f32 0.03125, %v1178_v14 }
 0x8a6   :  { %v1185_v16 = vsub.f32 %v1173_v8, %v1183_v13 }
 0x8a7   :  { %v1184_v17 = vsub.f32 %v1172_v9, %v1182_v15 }
 0x8a8   :  { %v1187_v20 = vmul.f32 %v1185_v16, %v1185_v16 }
 0x8a9   :  { %v1186_v18 = vmul.f32 %v1184_v17, %v1184_v17 }
 0x8aa   :  { %v1191_v35 = vsel %vm242_vm0, %v1187_v20, 0.0 }
 0x8ab   :  { %v1188_v19 = vsel %vm242_vm0, %v1186_v18, 0.0  ;;  %v3047_v18 = vld [vmem:[#allocation20] ss:$0 sm:$0xff] }
 0x8ac   :  { %1189 = vadd.xlane.f32.xlu0 %v1188_v19 }
 0x8b0   :  { %1192 = vadd.xlane.f32.xlu0 %v1191_v35 }
 0x939   :  { %v1190_v26 = vpop.xlane.xlu0 %1189 }
 0x93a   :  { %v1194_v27 = vmul.f32 0.03125, %v1190_v26 }
 0x93c   :  { %v1196_v28 = vadd.f32 1e-12, %v1194_v27 }
 0x93d   :  { %v1193_v29 = vpop.xlane.xlu0 %1192 }
 0x93e   :  { %3570 = vrsqrt.f32 %v1196_v28  ;;  %v1195_v30 = vmul.f32 0.03125, %v1193_v29 }
 0x940   :  { %v1197_v31 = vadd.f32 1e-12, %v1195_v30 }
 0x942   :  { %3572 = vrsqrt.f32 %v1197_v31 }
 0x948   :  { %v3571_v32 = vpop.eup %3570 }
 0x949   :  { %v1200_v37 = vmul.f32 %v3571_v32, %v1184_v17 }
 0x94b   :  { %v1208_v39 = vmul.f32 %v3042_v34, %v1200_v37 }
 0x94c   :  { %v3573_v40 = vpop.eup %3572 }
 0x94d   :  { %v1201_v41 = vmul.f32 %v3573_v40, %v1185_v16  ;;  %v1216_v42 = vadd.f32 %v3043_v38, %v1208_v39  ;;  %v3053_v39 = vld [vmem:[%s4777_s10 + $0x28] sm:$0xff] }
 0x94f   :  { %v1209_v43 = vmul.f32 %v3042_v34, %v1201_v41  ;;  %3281 = vmatprep.mubr.msk.f32.mxu1 %vm242_vm0, %v1216_v42  ;;  %v3054_v41 = vld [vmem:[%s4777_s10 + $0x30] sm:$0xff] }
 0x951   :  { %v1217_v44 = vadd.f32 %v3043_v38, %v1209_v43  ;;  %v3052_v38 = vld [vmem:[%s4777_s10 + $0x20] sm:$0xff] }
 0x952   :  { %v3464_v40 = vpack.c.bf16 %v3053_v39, %v3052_v38 }
 0x953   :  { %3282 = vmatmul.mubr.msk.f32.vlgmr.msra.gmra.mrb[10].mxu1 %vm242_vm0, %v1217_v44 }
 0x954   :  { %3465 = vmatprep.subr.bf16.mxu1 %v3464_v40 }
 0x955   :  { %3467 = vmatpush3.bf16.msra.mxu1 %v3464_v40 }
 0xa26   :  { %v3283_v59 = vpop.f32.mrb[10].mxu1 }
 0xa27   :  { %v1307_v60 = vadd.f32 %v3283_v59, %v3044_v58  ;;  %v1301_v61 = vpop.f32.mrb[11].mxu1 }
 0xa28   :  { %v1302_v63 = vadd.f32 %v3044_v58, %v1301_v61  ;;  %v3056_v61 = vld [vmem:[#allocation13 + $0x1] ss:$0 sm:$0xff] }
 0xa29   :  { %v1313_v0 = vmul.f32 0.044715, %v1307_v60  ;;  %v1311_v15 = vmul.f32 0.5, %v1307_v60 }
 0xa2a   :  { %v1312_v1 = vmul.f32 0.044715, %v1302_v63  ;;  %v1310_v13 = vmul.f32 0.5, %v1302_v63 }
 0xa2b   :  { %v1315_v2 = vmul.f32 %v1313_v0, %v1307_v60 }
 0xa2c   :  { %v1314_v3 = vmul.f32 %v1312_v1, %v1302_v63 }
 0xa2d   :  { %v1317_v4 = vmul.f32 %v1315_v2, %v1307_v60 }
 0xa2e   :  { %v1316_v5 = vmul.f32 %v1314_v3, %v1302_v63 }
 0xa2f   :  { %v1319_v6 = vadd.f32 %v1317_v4, %v1307_v60 }
 0xa30   :  { %v1318_v7 = vadd.f32 %v1316_v5, %v1302_v63 }
 0xa31   :  { %v1321_v8 = vmul.f32 0.7978846, %v1319_v6 }
 0xa32   :  { %v1320_v9 = vmul.f32 0.7978846, %v1318_v7 }
 0xa33   :  { %3574 = vtanh.f32 %v1321_v8 }
 0xa34   :  { %3576 = vtanh.f32 %v1320_v9 }
 0xa3d   :  { %v3575_v10 = vpop.eup %3574 }
 0xa3e   :  { %v3577_v11 = vpop.eup %3576  ;;  %v1325_v12 = vadd.f32 1.0, %v3575_v10 }
 0xa3f   :  { %v1324_v14 = vadd.f32 1.0, %v3577_v11 }
 0xa40   :  { %v1327_v17 = vmul.f32 %v1325_v12, %v1311_v15 }
 0xa41   :  { %v1326_v16 = vmul.f32 %v1324_v14, %v1310_v13 }
 0xa43   :  { %3300 = vmatprep.mubr.msk.f32.mxu0 %vm1343_vm6, %v1326_v16 }
 0xa44   :  { %3301 = vmatmul.mubr.msk.f32.vlgmr.msra.gmra.mrb[10].mxu0 %vm1343_vm6, %v1327_v17 }
 0xa45   :  { %3326 = vmatprep.mubr.msk.f32.mxu0 %vm3949_vm2, %v3948_v36 }
 0xb17   :  { %v3302_v19 = vpop.f32.mrb[10].mxu0 }
 0xb18   :  { %v1422_v20 = vadd.f32 %v3302_v19, %v3047_v18  ;;  %v1416_v35 = vpop.f32.mrb[11].mxu0 }
 0xb19   :  { %v1417_v33 = vadd.f32 %v3047_v18, %v1416_v35 }
 0xb1a   :  { %v1426_v21 = vadd.f32 %v1422_v20, %v1217_v44 }
 0xb1b   :  { %v1425_v22 = vadd.f32 %v1417_v33, %v1216_v42  ;;  %v3055_v42 = vld [vmem:[%s4777_s10 + $0x38] sm:$0xff] }
 0xb1c   :  { %v1432_v23 = vsel %vm242_vm0, %v1426_v21, 0.0  ;;  %v3468_v43 = vpack.c.bf16 %v3055_v42, %v3054_v41 }
 0xb1d   :  { %1433 = vadd.xlane.f32.xlu1 %v1432_v23  ;;  %v1429_v24 = vsel %vm242_vm0, %v1425_v22, 0.0 }
 0xb1e   :  { %1430 = vadd.xlane.f32.xlu0 %v1429_v24  ;;  %3469 = vmatprep.subr.bf16.mxu1 %v3468_v43 }
 0xb1f   :  { %3471 = vmatpush3.bf16.msra.mxu1 %v3468_v43 }
 0xb20   :  { %3314 = vmatprep.subr.mxu1 %v3948_v36 }
 0xbaa   :  { %v1434_v25 = vpop.xlane.xlu1 %1433 }
 0xbab   :  { %v1436_v26 = vmul.f32 0.03125, %v1434_v25  ;;  %v1431_v27 = vpop.xlane.xlu0 %1430 }
 0xbac   :  { %v1435_v28 = vmul.f32 0.03125, %v1431_v27 }
 0xbad   :  { %v1438_v29 = vsub.f32 %v1426_v21, %v1436_v26 }
 0xbae   :  { %v1437_v30 = vsub.f32 %v1425_v22, %v1435_v28 }
 0xbaf   :  { %v1440_v31 = vmul.f32 %v1438_v29, %v1438_v29 }
 0xbb0   :  { %v1439_v32 = vmul.f32 %v1437_v30, %v1437_v30 }
 0xbb1   :  { %v1444_v34 = vsel %vm242_vm0, %v1440_v31, 0.0 }
 0xbb2   :  { %1445 = vadd.xlane.f32.xlu1 %v1444_v34  ;;  %v1441_v37 = vsel %vm242_vm0, %v1439_v32, 0.0 }
 0xbb3   :  { %1442 = vadd.xlane.f32.xlu0 %v1441_v37 }
 0xc3f   :  { %v1446_v44 = vpop.xlane.xlu1 %1445 }
 0xc40   :  { %v1448_v45 = vmul.f32 0.03125, %v1446_v44  ;;  %v1443_v46 = vpop.xlane.xlu0 %1442 }
 0xc41   :  { %v1447_v47 = vmul.f32 0.03125, %v1443_v46 }
 0xc42   :  { %v1450_v48 = vadd.f32 1e-12, %v1448_v45 }
 0xc43   :  { %v1449_v49 = vadd.f32 1e-12, %v1447_v47 }
 0xc44   :  { %3578 = vrsqrt.f32 %v1450_v48 }
 0xc45   :  { %3580 = vrsqrt.f32 %v1449_v49 }
 0xc4e   :  { %v3579_v50 = vpop.eup %3578 }
 0xc4f   :  { %v3581_v53 = vpop.eup %3580  ;;  %v1454_v54 = vmul.f32 %v3579_v50, %v1438_v29 }
 0xc50   :  { %v1453_v55 = vmul.f32 %v3581_v53, %v1437_v30 }
 0xc51   :  { %v1462_v57 = vmul.f32 %v3050_v52, %v1454_v54 }
 0xc52   :  { %v1461_v58 = vmul.f32 %v3050_v52, %v1453_v55 }
 0xc53   :  { %v4487_v60 = vadd.f32 %v3051_v56, %v1462_v57 }
 0xc54   :  { %v4485_v59 = vadd.f32 %v3051_v56, %v1461_v58 }
 0xc56   :  { %3311 = vmatprep.mubr.msk.f32.mxu1 %vm242_vm0, %v4485_v59 }
 0xc57   :  { %3312 = vmatmul.mubr.msk.f32.vlgmr.msra.gmra.mrb[12].mxu1 %vm242_vm0, %v4487_v60 }
 0xc58   :  { %3316 = vmatprep.mubr.msk.f32.mxu1 %vm3949_vm2, %v3948_v36 }
 0xd2a   :  { %v3313_v63 = vpop.f32.mrb[12].mxu1 }
 0xd2b   :  { %v1562_v0 = vadd.f32 %v3313_v63, %v3056_v61  ;;  %v1556_v1 = vpop.f32.mrb[13].mxu1 }
 0xd2c   :  { %v1557_v2 = vadd.f32 %v3056_v61, %v1556_v1 }
 0xd2d   :  { %1566 = vst.msk [vmem:[#allocation2 + $0x8] sm:$0xff] %vm378_vm1, %v1562_v0 }
 0xd2e   :  { %1565 = vst.msk [vmem:[#allocation2] sm:$0xff] %vm378_vm1, %v1557_v2 }
 0xd34   :  { %v4503_v4 = vld [vmem:[#allocation2 + $0x8] sm:$0xff] }
 0xd35   :  { %v4497_v3 = vld [vmem:[#allocation2] sm:$0xff] }
 0xd36   :  { %1744 = vrot.lane.b32.xlu1 %v4497_v3, %s3950_s6  ;;  %1570 = vrot.lane.b32.xlu0 %v4497_v3, %s3951_s29 }
 0xd3a   :  { %1742 = vrot.lane.b32.xlu1 %v4497_v3, %s3952_s30  ;;  %2091 = vrot.lane.b32.xlu0 %v4503_v4, %s3950_s6 }
 0xd3e   :  { %1917 = vrot.lane.b32.xlu1 %v4503_v4, %s3951_s29 }
 0xd42   :  { %2089 = vrot.lane.b32.xlu1 %v4503_v4, %s3952_s30 }
 0xda8   :  { %v1745_v5 = vpop.permute.xlu1 %1744  ;;  %v1571_v6 = vpop.permute.xlu0 %1570 }
 0xda9   :  { %3315 = vmatpush3.xpose.msk.msra.mxu1 %vm386_vm3, %v1571_v6  ;;  %3325 = vmatpush3.xpose.msk.msra.mxu0 %vm386_vm3, %v1745_v5 }
 0xdaa   :  { %3334 = vmatprep.subr.mxu0 %v3948_v36  ;;  %3319 = vmatprep.subr.mxu1 %v3948_v36 }
 0xdac   :  { %v1743_v7 = vpop.permute.xlu1 %1742  ;;  %3317 = vmatmul.mubr.msk.f32.vlgmr.msra.gmra.mrb[14].mxu1 %vm386_vm3, %v4497_v3  ;;  %v2092_v9 = vpop.permute.xlu0 %2091 }
 0xdad   :  { %3327 = vmatmul.mubr.msk.f32.vlgmr.msra.gmra.mrb[12].mxu0 %vm386_vm3, %v1743_v7  ;;  %3321 = vmatprep.mubr.msk.f32.mxu1 %vm3949_vm2, %v3948_v36 }
 0xdae   :  { %3336 = vmatprep.mubr.msk.f32.mxu0 %vm3949_vm2, %v3948_v36 }
 0xdb0   :  { %v1918_v8 = vpop.permute.xlu1 %1917 }
 0xdb1   :  { %3335 = vmatpush3.xpose.msk.msra.mxu0 %vm386_vm3, %v1918_v8 }
 0xdb2   :  { %3344 = vmatprep.subr.mxu0 %v3948_v36 }
 0xdb4   :  { %3337 = vmatmul.mubr.msk.f32.vlgmr.msra.gmra.mrb[14].mxu0 %vm386_vm3, %v4503_v4  ;;  %v2090_v10 = vpop.permute.xlu1 %2089 }
 0xdb5   :  { %3345 = vmatpush3.xpose.msk.msra.mxu0 %vm386_vm3, %v2092_v9  ;;  %3346 = vmatprep.mubr.msk.f32.mxu0 %vm3949_vm2, %v3948_v36 }
 0xdb8   :  { %3347 = vmatmul.mubr.msk.f32.vlgmr.msra.gmra.mrb[16].mxu0 %vm386_vm3, %v2090_v10 }
 0xe7f   :  { %v1642_v11 = vpop.f32.mrb[14].mxu1 }
 0xe80   :  { %v1646_v12 = vmul.f32 0.25, %v1642_v11  ;;  %v3318_v13 = vpop.f32.mrb[15].mxu1  ;;  %v1816_v14 = vpop.f32.mrb[12].mxu0 }
 0xe81   :  { %v1820_v15 = vmul.f32 0.25, %v1816_v14  ;;  %v3328_v16 = vpop.f32.mrb[13].mxu0  ;;  %v3074_v13 = vld [vmem:[%s4779_s3 + $0x28] sm:$0xff] }
 0xe82   :  { %v1651_v17 = vadd.f32 %v4362_v51, %v1646_v12  ;;  %v3073_v12 = vld [vmem:[%s4779_s3 + $0x20] sm:$0xff]  ;;  %v3076_v16 = vld [vmem:[%s4779_s3 + $0x38] sm:$0xff] }
 0xe83   :  { %v1821_v18 = vadd.f32 %v4362_v51, %v1820_v15  ;;  %v3472_v14 = vpack.c.bf16 %v3074_v13, %v3073_v12  ;;  %v3075_v15 = vld [vmem:[%s4779_s3 + $0x30] sm:$0xff]  ;;  %v3096_v12 = vld [vmem:[%s4730_s13 + $0x78] sm:$0xff] }
 0xe84   :  { %v1652_v19 = vsel %vm467_vm4, %v1651_v17, -inf }
 0xe85   :  { %1653 = vmax.xlane.f32.xlu0 %v1652_v19  ;;  %v1822_v20 = vsel %vm467_vm4, %v1821_v18, -inf  ;;  %3473 = vmatprep.subr.bf16.mxu0 %v3472_v14 }
 0xe86   :  { %1823 = vmax.xlane.f32.xlu1 %v1822_v20  ;;  %3475 = vmatpush3.bf16.msra.mxu0 %v3472_v14  ;;  %v3086_v14 = vld [vmem:[#allocation19 + $0x1] ss:$0 sm:$0xff] }
 0xe87   :  { %v1989_v35 = vpop.f32.mrb[14].mxu0 }
 0xe88   :  { %v1993_v33 = vmul.f32 0.25, %v1989_v35  ;;  %v3338_v21 = vpop.f32.mrb[15].mxu0 }
 0xe8a   :  { %v1998_v22 = vadd.f32 %v4368_v62, %v1993_v33 }
 0xe8b   :  { %v2163_v23 = vpop.f32.mrb[16].mxu0 }
 0xe8c   :  { %v2167_v24 = vmul.f32 0.25, %v2163_v23  ;;  %v3348_v25 = vpop.f32.mrb[17].mxu0  ;;  %v1999_v26 = vsel %vm467_vm4, %v1998_v22, -inf }
 0xe8d   :  { %2000 = vmax.xlane.f32.xlu0 %v1999_v26 }
 0xe8e   :  { %v2168_v27 = vadd.f32 %v4368_v62, %v2167_v24 }
 0xe90   :  { %v2169_v51 = vsel %vm467_vm4, %v2168_v27, -inf }
 0xe91   :  { %2170 = vmax.xlane.f32.xlu0 %v2169_v51 }
 0xf12   :  { %v1654_v28 = vpop.xlane.xlu0 %1653 }
 0xf13   :  { %v1655_v29 = vsub.f32 %v1651_v17, %v1654_v28  ;;  %v1824_v30 = vpop.xlane.xlu1 %1823  ;;  %v3476_v17 = vpack.c.bf16 %v3076_v16, %v3075_v15 }
 0xf14   :  { %v1825_v31 = vsub.f32 %v1821_v18, %v1824_v30 }
 0xf15   :  { %v1656_v32 = vmul.f32 1.442695, %v1655_v29  ;;  %3477 = vmatprep.subr.bf16.mxu0 %v3476_v17 }
 0xf16   :  { %v1826_v34 = vmul.f32 1.442695, %v1825_v31  ;;  %3479 = vmatpush3.bf16.msra.mxu0 %v3476_v17 }
 0xf17   :  { %3582 = vpow2.f32 %v1656_v32 }
 0xf18   :  { %3584 = vpow2.f32 %v1826_v34 }
 0xf1a   :  { %v2001_v37 = vpop.xlane.xlu0 %2000 }
 0xf1b   :  { %v2002_v38 = vsub.f32 %v1998_v22, %v2001_v37  ;;  %v3077_v22 = vld [vmem:[#allocation14 + $0x1] ss:$0 sm:$0xff] }
 0xf1d   :  { %v2003_v39 = vmul.f32 1.442695, %v2002_v38 }
 0xf1e   :  { %v2171_v45 = vpop.xlane.xlu0 %2170 }
 0xf1f   :  { %3586 = vpow2.f32 %v2003_v39  ;;  %v2172_v46 = vsub.f32 %v2168_v27, %v2171_v45 }
 0xf21   :  { %v3583_v40 = vpop.eup %3582  ;;  %v2173_v47 = vmul.f32 1.442695, %v2172_v46 }
 0xf22   :  { %v3585_v41 = vpop.eup %3584  ;;  %v1658_v42 = vsel %vm467_vm4, %v3583_v40, 0.0 }
 0xf23   :  { %1659 = vadd.xlane.f32.xlu0 %v1658_v42  ;;  %v1828_v62 = vsel %vm467_vm4, %v3585_v41, 0.0  ;;  %3588 = vpow2.f32 %v2173_v47  ;;  %v3083_v42 = vld [vmem:[%s4728_s11 + $0x28] sm:$0xff] }
 0xf24   :  { %1829 = vadd.xlane.f32.xlu1 %v1828_v62 }
 0xf29   :  { %v3587_v43 = vpop.eup %3586 }
 0xf2a   :  { %v2005_v44 = vsel %vm467_vm4, %v3587_v43, 0.0 }
 0xf2b   :  { %2006 = vadd.xlane.f32.xlu0 %v2005_v44  ;;  %v3085_v44 = vld [vmem:[%s4728_s11 + $0x38] sm:$0xff] }
 0xf2d   :  { %v3589_v48 = vpop.eup %3588 }
 0xf2e   :  { %v2175_v49 = vsel %vm467_vm4, %v3589_v48, 0.0 }
 0xf35   :  { %1833 = vrot.lane.b32.xlu1 %v4497_v3, %s3953_s1 }
 0xf39   :  { %2010 = vrot.lane.b32.xlu1 %v4503_v4, %s3954_s4 }
 0xf41   :  { %1663 = vrot.lane.b32.xlu0 %v4497_v3, %s3954_s4 }
 0xf5d   :  { %2176 = vadd.xlane.f32.xlu1 %v2175_v49 }
 0xf6e   :  { %2180 = vrot.lane.b32.xlu1 %v4503_v4, %s3953_s1 }
 0xfb0   :  { %v1660_v50 = vpop.xlane.xlu0 %1659 }
 0xfb1   :  { %3590 = vrcp.f32 %v1660_v50  ;;  %v1830_v52 = vpop.xlane.xlu1 %1829 }
 0xfb2   :  { %3592 = vrcp.f32 %v1830_v52 }
 0xfb5   :  { %v1834_v56 = vpop.permute.xlu1 %1833 }
 0xfb8   :  { %v2007_v53 = vpop.xlane.xlu0 %2006 }
 0xfb9   :  { %3594 = vrcp.f32 %v2007_v53  ;;  %v2011_v63 = vpop.permute.xlu1 %2010 }
 0xfbb   :  { %v3591_v54 = vpop.eup %3590 }
 0xfbc   :  { %v1662_v55 = vmul.f32 %v3591_v54, %v3583_v40  ;;  %v1664_v57 = vpop.permute.xlu0 %1663  ;;  %v3593_v58 = vpop.eup %3592  ;;  %v3080_v54 = vld [vmem:[#allocation16 + $0x1] ss:$0 sm:$0xff] }
 0xfbd   :  { %3320 = vmatpush3.msra.mxu1 %v1664_v57  ;;  %v1832_v61 = vmul.f32 %v3593_v58, %v3585_v41 }
 0xfbe   :  { %3322 = vmatmul.mubr.msk.f32.vlgmr.msra.gmra.mrb[16].mxu1 %vm467_vm4, %v1662_v55  ;;  %3329 = vmatprep.subr.mxu1 %v3948_v36 }
 0xfbf   :  { %3330 = vmatpush3.msra.mxu1 %v1834_v56  ;;  %3331 = vmatprep.mubr.msk.f32.mxu1 %vm3949_vm2, %v3948_v36  ;;  %v3081_v56 = vld [vmem:[#allocation17 + $0x1] ss:$0 sm:$0xff] }
 0xfc0   :  { %3339 = vmatprep.subr.mxu1 %v3948_v36 }
 0xfc2   :  { %3332 = vmatmul.mubr.msk.f32.vlgmr.msra.gmra.mrb[18].mxu1 %vm467_vm4, %v1832_v61 }
 0xfc3   :  { %v3595_v0 = vpop.eup %3594  ;;  %3340 = vmatpush3.msra.mxu1 %v2011_v63  ;;  %3341 = vmatprep.mubr.msk.f32.mxu1 %vm3949_vm2, %v3948_v36 }
 0xfc4   :  { %v2009_v1 = vmul.f32 %v3595_v0, %v3587_v43  ;;  %3349 = vmatprep.subr.mxu1 %v3948_v36  ;;  %v3084_v43 = vld [vmem:[%s4728_s11 + $0x30] sm:$0xff] }
 0xfc5   :  { %v3484_v45 = vpack.c.bf16 %v3085_v44, %v3084_v43 }
 0xfc6   :  { %3342 = vmatmul.mubr.msk.f32.vlgmr.msra.gmra.mrb[20].mxu1 %vm467_vm4, %v2009_v1 }
 0xfc7   :  { %3351 = vmatprep.mubr.msk.f32.mxu1 %vm3949_vm2, %v3948_v36 }
 0xfea   :  { %v2177_v2 = vpop.xlane.xlu1 %2176 }
 0xfeb   :  { %3596 = vrcp.f32 %v2177_v2  ;;  %v3089_v2 = vld [vmem:[%s4730_s13 + $0x40] sm:$0xff] }
 0xfee   :  { %v2181_v3 = vpop.permute.xlu1 %2180 }
 0xfef   :  { %3350 = vmatpush3.msra.mxu1 %v2181_v3  ;;  %v3090_v3 = vld [vmem:[%s4730_s13 + $0x48] sm:$0xff] }
 0xff5   :  { %v3597_v4 = vpop.eup %3596 }
 0xff6   :  { %v2179_v5 = vmul.f32 %v3597_v4, %v3589_v48  ;;  %v3488_v4 = vpack.c.bf16 %v3090_v3, %v3089_v2 }
 0xff8   :  { %3352 = vmatmul.mubr.msk.f32.vlgmr.msra.gmra.mrb[22].mxu1 %vm467_vm4, %v2179_v5  ;;  %v3091_v5 = vld [vmem:[%s4730_s13 + $0x50] sm:$0xff]  ;;  %3489 = vmatprep.subr.bf16.mxu0 %v3488_v4 }
0x1091   :  { %v1735_v6 = vpop.f32.mrb[16].mxu1 }
0x1092   :  { %1739 = vst.msk [vmem:[#allocation3] sm:$0xff] %vm386_vm3, %v1735_v6  ;;  %v3323_v7 = vpop.f32.mrb[17].mxu1  ;;  %v3092_v6 = vld [vmem:[%s4730_s13 + $0x58] sm:$0xff] }
0x1093   :  { %v3492_v7 = vpack.c.bf16 %v3092_v6, %v3091_v5  ;;  %v3101_v5 = vld [vmem:[#allocation23 + $0x1] ss:$0 sm:$0xff] }
0x1095   :  { %v1905_v8 = vpop.f32.mrb[18].mxu1 }
0x1096   :  { %1910 = vrot.lane.b32.xlu0 %v1905_v8, %s4775_s8  ;;  %v3333_v9 = vpop.f32.mrb[19].mxu1  ;;  %v3093_v8 = vld [vmem:[%s4730_s13 + $0x60] sm:$0xff] }
0x1097   :  { %v3094_v9 = vld [vmem:[%s4730_s13 + $0x68] sm:$0xff] }
0x1099   :  { %v2082_v10 = vpop.f32.mrb[20].mxu1 }
0x109a   :  { %2086 = vst.msk [vmem:[#allocation3 + $0x8] sm:$0xff] %vm386_vm3, %v2082_v10  ;;  %v3343_v11 = vpop.f32.mrb[21].mxu1  ;;  %v3496_v10 = vpack.c.bf16 %v3094_v9, %v3093_v8 }
0x109b   :  { %v3095_v11 = vld [vmem:[%s4730_s13 + $0x70] sm:$0xff] }
0x109c   :  { %v3500_v13 = vpack.c.bf16 %v3096_v12, %v3095_v11  ;;  %v2738_v11 = vld [vmem:[%s4734_s17 + $0x8] sm:$0xff] }
0x10cb   :  { %v2252_v18 = vpop.f32.mrb[22].mxu1 }
0x10cc   :  { %2257 = vrot.lane.b32.xlu1 %v2252_v18, %s4775_s8  ;;  %v3353_v19 = vpop.f32.mrb[23].mxu1 }
0x1108   :  { %v1911_v20 = vpop.permute.xlu0 %1910 }
0x1109   :  { %1913 = vst.msk [vmem:[#allocation3] sm:$0xff] %vm729_vm5, %v1911_v20 }
0x1110   :  { %v2261_v35 = vld [vmem:[#allocation3] sm:$0xff] }
0x1111   :  { %3362 = vmatprep.mubr.msk.f32.mxu0 %vm242_vm0, %v2261_v35 }
0x113e   :  { %v2258_v33 = vpop.permute.xlu1 %2257 }
0x113f   :  { %2260 = vst.msk [vmem:[#allocation3 + $0x8] sm:$0xff] %vm729_vm5, %v2258_v33 }
0x1146   :  { %v2262_v21 = vld [vmem:[#allocation3 + $0x8] sm:$0xff] }
0x1147   :  { %3363 = vmatmul.mubr.msk.f32.vlgmr.msra.gmra.mrb[18].mxu0 %vm242_vm0, %v2262_v21 }
0x1148   :  { %3491 = vmatpush3.bf16.msra.mxu0 %v3488_v4 }
0x1149   :  { %3493 = vmatprep.subr.bf16.mxu0 %v3492_v7 }
0x114c   :  { %3495 = vmatpush3.bf16.msra.mxu0 %v3492_v7 }
0x114d   :  { %3497 = vmatprep.subr.bf16.mxu0 %v3496_v10 }
0x1150   :  { %3499 = vmatpush3.bf16.msra.mxu0 %v3496_v10  ;;  %v2737_v10 = vld [vmem:[%s4734_s17] sm:$0xff] }
0x1151   :  { %3501 = vmatprep.subr.bf16.mxu0 %v3500_v13 }
0x1154   :  { %3503 = vmatpush3.bf16.msra.mxu0 %v3500_v13  ;;  %v2663_v13 = vld [vmem:[#allocation10] sm:$0xf] }
0x121a   :  { %v3364_v23 = vpop.f32.mrb[18].mxu0 }
0x121b   :  { %v2354_v24 = vadd.f32 %v3364_v23, %v3077_v22  ;;  %v2348_v25 = vpop.f32.mrb[19].mxu0 }
0x121c   :  { %v2349_v26 = vadd.f32 %v3077_v22, %v2348_v25 }
0x121d   :  { %v2358_v27 = vadd.f32 %v2354_v24, %v4487_v60 }
0x121e   :  { %v2357_v51 = vadd.f32 %v2349_v26, %v4485_v59  ;;  %v3082_v59 = vld [vmem:[%s4728_s11 + $0x20] sm:$0xff] }
0x121f   :  { %v2366_v28 = vsel %vm242_vm0, %v2358_v27, 0.0  ;;  %v3480_v62 = vpack.c.bf16 %v3083_v42, %v3082_v59 }
0x1220   :  { %2367 = vadd.xlane.f32.xlu1 %v2366_v28  ;;  %v2363_v29 = vsel %vm242_vm0, %v2357_v51, 0.0 }
0x1221   :  { %2364 = vadd.xlane.f32.xlu0 %v2363_v29  ;;  %3481 = vmatprep.subr.bf16.mxu1 %v3480_v62 }
0x1222   :  { %3483 = vmatpush3.bf16.msra.mxu1 %v3480_v62 }
0x1223   :  { %3485 = vmatprep.subr.bf16.mxu1 %v3484_v45 }
0x1226   :  { %3487 = vmatpush3.bf16.msra.mxu1 %v3484_v45 }
0x12ad   :  { %v2368_v30 = vpop.xlane.xlu1 %2367 }
0x12ae   :  { %v2370_v31 = vmul.f32 0.03125, %v2368_v30  ;;  %v2365_v32 = vpop.xlane.xlu0 %2364 }
0x12af   :  { %v2369_v34 = vmul.f32 0.03125, %v2365_v32 }
0x12b0   :  { %v2372_v37 = vsub.f32 %v2358_v27, %v2370_v31 }
0x12b1   :  { %v2371_v38 = vsub.f32 %v2357_v51, %v2369_v34 }
0x12b2   :  { %v2374_v41 = vmul.f32 %v2372_v37, %v2372_v37 }
0x12b3   :  { %v2373_v39 = vmul.f32 %v2371_v38, %v2371_v38 }
0x12b4   :  { %v2378_v60 = vsel %vm242_vm0, %v2374_v41, 0.0 }
0x12b5   :  { %v2375_v40 = vsel %vm242_vm0, %v2373_v39, 0.0 }
0x12b6   :  { %2376 = vadd.xlane.f32.xlu0 %v2375_v40 }
0x12ba   :  { %2379 = vadd.xlane.f32.xlu0 %v2378_v60 }
0x1343   :  { %v2377_v46 = vpop.xlane.xlu0 %2376 }
0x1344   :  { %v2381_v47 = vmul.f32 0.03125, %v2377_v46 }
0x1346   :  { %v2383_v48 = vadd.f32 1e-12, %v2381_v47 }
0x1347   :  { %v2380_v49 = vpop.xlane.xlu0 %2379 }
0x1348   :  { %3598 = vrsqrt.f32 %v2383_v48  ;;  %v2382_v50 = vmul.f32 0.03125, %v2380_v49 }
0x134a   :  { %v2384_v52 = vadd.f32 1e-12, %v2382_v50 }
0x134c   :  { %3600 = vrsqrt.f32 %v2384_v52 }
0x1352   :  { %v3599_v53 = vpop.eup %3598 }
0x1353   :  { %v2387_v55 = vmul.f32 %v3599_v53, %v2371_v38 }
0x1355   :  { %v2395_v57 = vmul.f32 %v3080_v54, %v2387_v55 }
0x1356   :  { %v3601_v58 = vpop.eup %3600 }
0x1357   :  { %v2388_v61 = vmul.f32 %v3601_v58, %v2372_v37  ;;  %v2403_v63 = vadd.f32 %v3081_v56, %v2395_v57  ;;  %v3097_v37 = vld [vmem:[#allocation20 + $0x1] ss:$0 sm:$0xff] }
0x1359   :  { %v2396_v0 = vmul.f32 %v3080_v54, %v2388_v61  ;;  %3373 = vmatprep.mubr.msk.f32.mxu1 %vm242_vm0, %v2403_v63  ;;  %v3955_v54 = vmov 0.0|0.0  }
0x135a   :  { %3504 = vmatprep.subr.bf16.mxu1 %v3955_v54 }
0x135b   :  { %v2404_v1 = vadd.f32 %v3081_v56, %v2396_v0 }
0x135d   :  { %3374 = vmatmul.mubr.msk.f32.vlgmr.msra.gmra.mrb[24].mxu1 %vm242_vm0, %v2404_v1 }
0x135e   :  { %3399 = vmatprep.mubr.msk.f32.mxu1 %vm3949_vm2, %v3948_v36 }
0x1430   :  { %v3375_v15 = vpop.f32.mrb[24].mxu1 }
0x1431   :  { %v2496_v16 = vadd.f32 %v3375_v15, %v3086_v14  ;;  %v2490_v17 = vpop.f32.mrb[25].mxu1  ;;  %v2739_v15 = vld [vmem:[%s4734_s17 + $0x10] sm:$0xff] }
0x1432   :  { %v2491_v18 = vadd.f32 %v3086_v14, %v2490_v17  ;;  %v3508_v14 = vpack.c.bf16 %v2738_v11, %v2737_v10 }
0x1433   :  { %v2502_v19 = vmul.f32 0.044715, %v2496_v16  ;;  %v2500_v31 = vmul.f32 0.5, %v2496_v16 }
0x1434   :  { %v2501_v20 = vmul.f32 0.044715, %v2491_v18  ;;  %v2499_v29 = vmul.f32 0.5, %v2491_v18 }
0x1435   :  { %v2504_v35 = vmul.f32 %v2502_v19, %v2496_v16 }
0x1436   :  { %v2503_v33 = vmul.f32 %v2501_v20, %v2491_v18  ;;  %v3103_v20 = vld [vmem:[%s4735_s18] ss:$0 sm:$0xff] }
0x1437   :  { %v2506_v21 = vmul.f32 %v2504_v35, %v2496_v16 }
0x1438   :  { %v2505_v22 = vmul.f32 %v2503_v33, %v2491_v18 }
0x1439   :  { %v2508_v23 = vadd.f32 %v2506_v21, %v2496_v16  ;;  %v2740_v16 = vld [vmem:[%s4734_s17 + $0x18] sm:$0xff] }
0x143a   :  { %v2507_v24 = vadd.f32 %v2505_v22, %v2491_v18  ;;  %v3511_v17 = vpack.c.bf16 %v2740_v16, %v2739_v15 }
0x143b   :  { %v2510_v25 = vmul.f32 0.7978846, %v2508_v23 }
0x143c   :  { %v2509_v26 = vmul.f32 0.7978846, %v2507_v24 }
0x143d   :  { %3602 = vtanh.f32 %v2510_v25 }
0x143e   :  { %3604 = vtanh.f32 %v2509_v26 }
0x1447   :  { %v3603_v27 = vpop.eup %3602 }
0x1448   :  { %v3605_v51 = vpop.eup %3604  ;;  %v2514_v28 = vadd.f32 1.0, %v3603_v27 }
0x1449   :  { %v2513_v30 = vadd.f32 1.0, %v3605_v51 }
0x144a   :  { %v2516_v34 = vmul.f32 %v2514_v28, %v2500_v31 }
0x144b   :  { %v2515_v32 = vmul.f32 %v2513_v30, %v2499_v29 }
0x144d   :  { %3392 = vmatprep.mubr.msk.f32.mxu0 %vm1343_vm6, %v2515_v32 }
0x144e   :  { %3393 = vmatmul.mubr.msk.f32.vlgmr.msra.gmra.mrb[20].mxu0 %vm1343_vm6, %v2516_v34 }
0x1521   :  { %v3394_v38 = vpop.f32.mrb[20].mxu0 }
0x1522   :  { %v2612_v39 = vadd.f32 %v3394_v38, %v3097_v37  ;;  %v2606_v40 = vpop.f32.mrb[21].mxu0 }
0x1523   :  { %v2607_v41 = vadd.f32 %v3097_v37, %v2606_v40  ;;  %v2861_v40 = vld [vmem:[%s4738_s21 + $0x8] sm:$0xff] }
0x1524   :  { %v2616_v60 = vadd.f32 %v2612_v39, %v2404_v1  ;;  %v3100_v1 = vld [vmem:[#allocation22 + $0x1] ss:$0 sm:$0xff] }
0x1525   :  { %v2615_v59 = vadd.f32 %v2607_v41, %v2403_v63  ;;  %v2860_v39 = vld [vmem:[%s4738_s21] sm:$0xff] }
0x1526   :  { %v2624_v42 = vsel %vm242_vm0, %v2616_v60, 0.0  ;;  %v3514_v41 = vpack.c.bf16 %v2861_v40, %v2860_v39 }
0x1527   :  { %2625 = vadd.xlane.f32.xlu1 %v2624_v42  ;;  %v2621_v62 = vsel %vm242_vm0, %v2615_v59, 0.0 }
0x1528   :  { %2622 = vadd.xlane.f32.xlu0 %v2621_v62  ;;  %v2946_v62 = vld [vmem:[%s4740_s23] sm:$0xf] }
0x15b4   :  { %v2626_v43 = vpop.xlane.xlu1 %2625 }
0x15b5   :  { %v2628_v44 = vmul.f32 0.03125, %v2626_v43  ;;  %v2623_v45 = vpop.xlane.xlu0 %2622  ;;  %v3956_v43 = vmov 0  }
0x15b6   :  { %v2627_v46 = vmul.f32 0.03125, %v2623_v45  ;;  %3548 = vset.pattern.permute.xlu1 %v3956_v43  ;;  %3549 = vset.pattern.permute.xlu0 %v3956_v43 }
0x15b7   :  { %v2630_v47 = vsub.f32 %v2616_v60, %v2628_v44  ;;  %v2862_v60 = vld [vmem:[%s4738_s21 + $0x10] sm:$0xff] }
0x15b8   :  { %v2629_v48 = vsub.f32 %v2615_v59, %v2627_v46  ;;  %v2863_v59 = vld [vmem:[%s4738_s21 + $0x18] sm:$0xff] }
0x15b9   :  { %v2632_v49 = vmul.f32 %v2630_v47, %v2630_v47  ;;  %v3517_v42 = vpack.c.bf16 %v2863_v59, %v2862_v60 }
0x15ba   :  { %v2631_v50 = vmul.f32 %v2629_v48, %v2629_v48 }
0x15bb   :  { %v2636_v52 = vsel %vm242_vm0, %v2632_v49, 0.0 }
0x15bc   :  { %2637 = vadd.xlane.f32.xlu1 %v2636_v52  ;;  %v2633_v53 = vsel %vm242_vm0, %v2631_v50, 0.0  ;;  %v3106_v50 = vld [vmem:[%s4737_s20] ss:$0 sm:$0xff] }
0x15bd   :  { %2634 = vadd.xlane.f32.xlu0 %v2633_v53 }
0x1649   :  { %v2638_v55 = vpop.xlane.xlu1 %2637 }
0x164a   :  { %v2640_v56 = vmul.f32 0.03125, %v2638_v55  ;;  %v2635_v57 = vpop.xlane.xlu0 %2634 }
0x164b   :  { %v2639_v58 = vmul.f32 0.03125, %v2635_v57 }
0x164c   :  { %v2642_v61 = vadd.f32 1e-12, %v2640_v56 }
0x164d   :  { %v2641_v63 = vadd.f32 1e-12, %v2639_v58 }
0x164e   :  { %3606 = vrsqrt.f32 %v2642_v61 }
0x164f   :  { %3608 = vrsqrt.f32 %v2641_v63 }
0x1658   :  { %v3607_v0 = vpop.eup %3606 }
0x1659   :  { %v3609_v2 = vpop.eup %3608  ;;  %v2646_v3 = vmul.f32 %v3607_v0, %v2630_v47  ;;  %v2947_v0 = vlaneseq }
0x165a   :  { %v2645_v4 = vmul.f32 %v3609_v2, %v2629_v48  ;;  %v3105_v48 = vld [vmem:[%s4736_s19] ss:$0 sm:$0xff]  ;;  %s3957_s19 = smov [#allocation25]  }
0x165b   :  { %v2654_v6 = vmul.f32 %v3100_v1, %v2646_v3  ;;  %v2948_v2 = vand.u32 127, %v2947_v0  ;;  %s2992_s20 = sshll.u32 %s3957_s19, 4  ;;  %s2993_s20 = int_to_ptr.vmem [resolvable:$true] %s2992_s20 }
0x165c   :  { %v2653_v7 = vmul.f32 %v3100_v1, %v2645_v4  ;;  %p3887_p13 = scmp.lt.s32.totalorder %s2993_s20, %s2993_s20 }
0x165d   :  { %v2662_v8 = vadd.f32 %v3101_v5, %v2654_v6 }
0x165e   :  { %v2661_v9 = vadd.f32 %v3101_v5, %v2653_v7 }
0x1660   :  { %v3505_v12 = vpack.c.bf16 %v2662_v8, %v2661_v9 }
0x1662   :  { %3506 = vmatpush3.bf16.msra.mxu1 %v3505_v12 }
0x1663   :  { %3507 = vmatprep.subr.bf16.mxu1 %v3955_v54 }
0x1665   :  { %3400 = vmatmul.mubr.msk.f32.vlgmr.msra.gmra.mrb[26].mxu1 %vm386_vm3, %v2663_v13 }
0x1666   :  { %3509 = vmatpush3.bf16.msra.mxu1 %v3508_v14  ;;  %3410 = vmatprep.mubr.msk.f32.mxu1 %vm3949_vm2, %v3948_v36 }
0x1667   :  { %3510 = vmatprep.subr.bf16.mxu1 %v3955_v54 }
0x166a   :  { %3512 = vmatpush3.bf16.msra.mxu1 %v3511_v17 }
0x166b   :  { %3513 = vmatprep.subr.bf16.mxu1 %v3955_v54 }
0x1738   :  { %v2733_v18 = vpop.f32.mrb[26].mxu1 }
0x1739   :  { %v3401_v19 = vpop.f32.mrb[27].mxu1  ;;  %3411 = vmatmul.mubr.msk.f32.vlgmr.msra.gmra.mrb[28].mxu1 %vm242_vm0, %v2733_v18 }
0x173a   :  { %3421 = vmatprep.mubr.msk.f32.mxu1 %vm3949_vm2, %v3948_v36  ;;  %3515 = vmatpush3.bf16.msra.mxu1 %v3514_v41 }
0x173b   :  { %3516 = vmatprep.subr.bf16.mxu1 %v3955_v54  ;;  %v3107_v54 = vld [vmem:[%s4739_s22] ss:$0 sm:$0xff]  ;;  %s3882_s22 = scalar_lea.vmem %s2993_s20, 64 }
0x173c   :  { %p3883_p12 = scmp.ne.s32.totalorder %s2993_s20, %s3882_s22  ;;  %p3888_p0 = scmp.lt.s32.totalorder %s3882_s22, %s3882_s22 }
0x173e   :  { %3518 = vmatpush3.bf16.msra.mxu1 %v3517_v42  ;;  %p3889_p1 = por %p3888_p0, %p3887_p13 }
0x1740   :  { %p3890_p2 = pnand %p3889_p1, %p3883_p12 }
0x180c   :  { %v2817_v35 = vpop.f32.mrb[28].mxu1 }
0x180d   :  { %v2818_v33 = vadd.f32 %v3103_v20, %v2817_v35  ;;  %v3412_v21 = vpop.f32.mrb[29].mxu1 }
0x180f   :  { %v2822_v22 = vmul.f32 0.044715, %v2818_v33  ;;  %v2821_v51 = vmul.f32 0.5, %v2818_v33 }
0x1811   :  { %v2823_v23 = vmul.f32 %v2822_v22, %v2818_v33 }
0x1813   :  { %v2824_v24 = vmul.f32 %v2823_v23, %v2818_v33 }
0x1815   :  { %v2825_v25 = vadd.f32 %v2824_v24, %v2818_v33 }
0x1817   :  { %v2826_v26 = vmul.f32 0.7978846, %v2825_v25 }
0x1819   :  { %3610 = vtanh.f32 %v2826_v26 }
0x1823   :  { %v3611_v27 = vpop.eup %3610 }
0x1824   :  { %v2828_v28 = vadd.f32 1.0, %v3611_v27 }
0x1826   :  { %v2829_v29 = vmul.f32 %v2828_v28, %v2821_v51 }
0x1828   :  { %v2833_v30 = vsel %vm2832_vm7, %v2829_v29, 0.0 }
0x1829   :  { %2834 = vadd.xlane.f32.xlu0 %v2833_v30 }
0x18b6   :  { %v2835_v31 = vpop.xlane.xlu0 %2834 }
0x18b7   :  { %v2836_v32 = vmul.f32 0.03125, %v2835_v31 }
0x18b9   :  { %v2837_v34 = vsub.f32 %v2829_v29, %v2836_v32 }
0x18bb   :  { %v2838_v37 = vmul.f32 %v2837_v34, %v2837_v34 }
0x18bd   :  { %v2839_v38 = vsel %vm2832_vm7, %v2838_v37, 0.0 }
0x18be   :  { %2840 = vadd.xlane.f32.xlu1 %v2839_v38 }
0x18cf   :  { %2950 = vperm.xlu1 %3548, %v2946_v62  }
0x194b   :  { %v2841_v44 = vpop.xlane.xlu1 %2840 }
0x194c   :  { %v2842_v45 = vmul.f32 0.03125, %v2841_v44 }
0x194e   :  { %v2843_v46 = vadd.f32 1e-12, %v2842_v45 }
0x194f   :  { %v2951_v3 = vpop.permute.xlu1 %2950 }
0x1950   :  { %3612 = vrsqrt.f32 %v2843_v46  ;;  %vm2952_vm9 = vcmp.eq.s32.totalorder %v2948_v2, %v2951_v3 }
0x1951   :  { %v3109_v4 = vsel %vm2952_vm9, 1.0, %v3948_v36 }
0x195a   :  { %v3613_v47 = vpop.eup %3612 }
0x195b   :  { %v2845_v49 = vmul.f32 %v3613_v47, %v2837_v34 }
0x195d   :  { %v2852_v52 = vmul.f32 %v3105_v48, %v2845_v49 }
0x195f   :  { %v2859_v53 = vadd.f32 %v3106_v50, %v2852_v52 }
0x1961   :  { %3422 = vmatmul.mubr.msk.f32.vlgmr.msra.gmra.mrb[30].mxu1 %vm242_vm0, %v2859_v53 }
0x1a34   :  { %v2940_v55 = vpop.f32.mrb[30].mxu1 }
0x1a35   :  { %v2941_v56 = vadd.f32 %v3107_v54, %v2940_v55  ;;  %v3423_v57 = vpop.f32.mrb[31].mxu1 }
0x1a37   :  { %v2955_v58 = vsel %vm2944_vm8, %v2941_v56, -inf  ;;  %2945 = vst.msk [vmem:[#allocation25] sm:$0xf] %vm2944_vm8, %v2941_v56  ;;  %v2967_v7 = vmul.f32 %v3109_v4, %v2941_v56 }
0x1a38   :  { %2956 = vmax.xlane.f32.xlu0 %v2955_v58 }
0x1a39   :  { %v2968_v8 = vsel %vm2944_vm8, %v2967_v7, 0.0 }
0x1ac5   :  { %v2957_v61 = vpop.xlane.xlu0 %2956 }
0x1ac6   :  { %v2958_v63 = vsub.f32 %v2941_v56, %v2957_v61 }
0x1ac8   :  { %v2959_v1 = vmul.f32 1.442695, %v2958_v63 }
0x1aca   :  { %3614 = vpow2.f32 %v2959_v1 }
0x1ad4   :  { %v3615_v5 = vpop.eup %3614 }
0x1ad5   :  { %v2961_v6 = vsel %vm2944_vm8, %v3615_v5, 0.0 }
0x1ad6   :  { %2962 = vadd.xlane.f32.xlu0 %v2961_v6 }
0x1ada   :  { %2969 = vadd.xlane.f32.xlu0 %v2968_v8 }
0x1b63   :  { %v2963_v9 = vpop.xlane.xlu0 %2962 }
0x1b64   :  { %3616 = vlog2.f32 %v2963_v9 }
0x1b67   :  { %v2970_v13 = vpop.xlane.xlu0 %2969 }
0x1b6e   :  { %v3617_v10 = vpop.eup %3616 }
0x1b6f   :  { %v2965_v11 = vmul.f32 0.6931472, %v3617_v10 }
0x1b71   :  { %v2966_v12 = vadd.f32 %v2965_v11, %v2957_v61 }
0x1b73   :  { %v2971_v14 = vsub.f32 %v2966_v12, %v2970_v13 }
0x1b75   :  { %v2973_v15 = vsel %vm2972_vm10, %v2971_v14, 0.0 }
0x1b76   :  { %2974 = vadd.xlane.f32.xlu0 %v2973_v15 }
0x1b77   :  { %3893 = shalt.err (!%p3890_p2)
}
0x1b78   :  { %s3894_s0 = scalar_lea.hbm %s4741_s24, 64 }
0x1b79   :  { %p3895_p3 = scmp.ne.s32.totalorder %s4741_s24, %s3894_s0  ;;  %p3898_p4 = scmp.lt.u32.totalorder %s3894_s0, %s4741_s24 }
0x1b7b   :  { %p3900_p5 = pnand %p3898_p4, %p3895_p3 }
0x1b7d   :  { %3903 = shalt.err (!%p3900_p5)
}
0x1b7e   :  { %2995 = dma.vmem_to_hbm [thread:$0]  %s2993_s20, 64, %s4741_s24, [#allocation6]  }
0x1b7f   :  { %s4780_s2 = sld [smem:[#allocation46_spill]] }
0x1b85   :  { %s3904_s25 = scalar_lea.hbm %s4780_s2, 16 }
0x1b86   :  { %p3905_p6 = scmp.ne.s32.totalorder %s4780_s2, %s3904_s25  ;;  %p3908_p7 = scmp.lt.u32.totalorder %s3904_s25, %s4780_s2 }
0x1b88   :  { %p3910_p8 = pnand %p3908_p7, %p3905_p6 }
0x1c03   :  { %v2975_v36 = vpop.xlane.xlu0 %2974 }
0x1c04   :  { %v2976_v16 = vrot.slane %v2975_v36, 4 }
0x1c06   :  { %v2977_v17 = vadd.f32 %v2976_v16, %v2975_v36 }
0x1c08   :  { %v2978_v18 = vrot.slane %v2977_v17, 2 }
0x1c0a   :  { %v2979_v19 = vadd.f32 %v2978_v18, %v2977_v17 }
0x1c0c   :  { %v2980_v20 = vrot.slane %v2979_v19, 1 }
0x1c0e   :  { %v2981_v35 = vadd.f32 %v2980_v20, %v2979_v19 }
0x1c10   :  { %3519 = vpush %v2981_v35 }
0x1c41   :  { %s3520_s17 = spop %3519 }
0x1c42   :  { %s2983_s14 = smul.f32 0.25, %s3520_s17 }
0x1c44   :  { %2985 = sst [smem:[#allocation26]] %s2983_s14 }
0x1c45   :  { %3913 = shalt.err (!%p3910_p8)
}
0x1c46   :  { %s3958_s29 = smov [#allocation26]  }
0x1c47   :  { %3003 = dma.smem_to_hbm %s3958_s29, 16, %s4780_s2, [#allocation7]  }
0x1c48   :  { %3928 = dma.done.wait [#allocation6], 64  }
0x1c49   :  { %3929 = vsyncadd [#allocation6], 4294967232 }
0x1c4a   :  { %3930 = dma.done.wait [#allocation7], 16  }
0x1c4b   :  { %3931 = vsyncadd [#allocation7], 4294967280 }
0x1c4c   :  { %3010 = sfence }
0x1c4d   :  { %3011 = vsyncpa [#allocation5], 1 }
0x1c4e   :  { %3012 = vsyncpa [#allocation9], 1 }
0x1c4f   :  { %3013 = vsyncpa [#allocation12], 1 }
0x1c50   :  { %3014 = vsyncpa [#allocation15], 1 }
0x1c51   :  { %3015 = vsyncpa [#allocation18], 1 }
0x1c52   :  { %3016 = vsyncpa [#allocation21], 1 }
0x1c53   :  { %3017 = vsyncpa [#allocation24], 1 }
0x1c54   :  { %3018 = vsyncpa [#allocation6], 1 }
0x1c55   :  { %3019 = vsyncpa [#allocation7], 1 }

</bundles_post_ra>
